<compile_context>
chip_gen: v6e
topology: v6e:2x2x1
jax: 0.10.0
libtpu: 0.0.40
codegen_flags: <defaults>
</compile_context>

<pallas_src>
import functools
import math

import jax
import jax.numpy as jnp
from jax.experimental import pallas as pl
from jax.experimental.pallas import tpu as pltpu

# (fan_in, fan_out) for fc1 .. fc11
LAYER_DIMS = [(1, 64)] + [(64, 64)] * 8 + [(64, 32), (32, 1)]


def polynomial_mlp_kernel(
    x_ref,
    w1, b1, w2, b2, w3, b3, w4, b4, w5, b5, w6, b6,
    w7, b7, w8, b8, w9, b9, w10, b10, w11, b11,
    o_ref,
    *,
    use_bf16_tanh,
):
    f32 = jnp.float32

    def linear(h, w, b):
        return jnp.dot(h, w[...], preferred_element_type=f32) + b[...]

    def act(h):
        # EUP-bound workload: on v6e/v7x the bf16 tanh path runs ~2x faster
        # and the f32<->bf16 casts ride in otherwise-idle VALU slots.
        if use_bf16_tanh:
            return jnp.tanh(h.astype(jnp.bfloat16)).astype(f32)
        return jnp.tanh(h)

    # fc1: (TB, 2) @ (2, 128) -- two batch rows packed along lanes.
    h = act(linear(x_ref[...], w1, b1))          # (TB, 128)
    y = h

    # block 1: fc2, fc3, fc4 + residual
    h = act(linear(h, w2, b2))
    h = act(linear(h, w3, b3))
    h = linear(h, w4, b4)
    h = act(h + y)
    y = h

    # block 2: fc5, fc6, fc7 + residual
    h = act(linear(h, w5, b5))
    h = act(linear(h, w6, b6))
    h = linear(h, w7, b7)
    h = act(h + y)
    y = h

    # block 3: fc8, fc9 + residual
    h = act(linear(h, w8, b8))
    h = act(linear(h, w9, b9))
    h = act(h + y)

    # head: fc10 (tanh), fc11
    h = act(linear(h, w10, b10))                 # (TB, 64) = 2 x 32 packed
    # fc11 block-diag: (TB, 64) @ (64, 2) -> one scalar per packed half-row.
    # TODO(synk): last-dim-2 output lowers to masked stores; hidden under the
    # EUP (tanh) bottleneck, so no lane-dense repack unless profiling shows an
    # epilogue wall-minus-compute gap.
    o_ref[...] = linear(h, w11, b11).astype(o_ref.dtype)


def init_params(key):
    """Xavier-uniform weights (as in the PyTorch module), PyTorch-default
    uniform(-1/sqrt(fan_in), 1/sqrt(fan_in)) biases.  Weights are stored in
    (in_features, out_features) layout so the kernel computes y = x @ W + b."""
    params = []
    for (fan_in, fan_out) in LAYER_DIMS:
        key, kw, kb = jax.random.split(key, 3)
        w_bound = math.sqrt(6.0 / (fan_in + fan_out))
        w = jax.random.uniform(kw, (fan_in, fan_out), jnp.float32, -w_bound, w_bound)
        b_bound = 1.0 / math.sqrt(fan_in)
        b = jax.random.uniform(kb, (1, fan_out), jnp.float32, -b_bound, b_bound)
        params.append((w, b))
    return params


def pack_params(params):
    """Block-diagonal 2x weights / tiled biases so two batch rows share one
    sublane row (row 2i features in lanes [0,F), row 2i+1 in lanes [F,2F))."""
    packed = []
    for (w, b) in params:
        fin, fout = w.shape
        wp = jnp.zeros((2 * fin, 2 * fout), jnp.float32)
        wp = wp.at[:fin, :fout].set(w)
        wp = wp.at[fin:, fout:].set(w)
        bp = jnp.concatenate([b, b], axis=-1)     # (1, 2*fout)
        packed.append((wp, bp))
    return packed


def _device_defaults():
    """Per-generation defaults: v5e -> f32 tanh, smaller tile; v6e/v7x -> bf16
    tanh, tile 256.  Unknown chips fall back to the safe f32 path."""
    kind = jax.devices()[0].device_kind.lower()
    is_v5e = ("v5e" in kind) or ("v5 lite" in kind) or ("v5lite" in kind)
    use_bf16_tanh = ("v6" in kind) or ("v7" in kind)
    tile_rows = 128 if is_v5e else 256
    return tile_rows, use_bf16_tanh


def polynomial_model_forward(x, params, *, tile_rows=None, use_bf16_tanh=None):
    """x: (B, 1) float32 -> (B, 1) float32."""
    B = x.shape[0]
    auto_tile, auto_bf16 = _device_defaults()
    if tile_rows is None:
        tile_rows = auto_tile
    if use_bf16_tanh is None:
        use_bf16_tanh = auto_bf16

    packed = pack_params(params)

    # Pack 2 batch rows per packed row; pad packed batch to a tile multiple.
    Bp = (B + 1) // 2
    # Cap the tile at ceil(Bp/2) (rounded to sublane multiple) so the grid has
    # >= 2 steps whenever possible -> both v7x TensorCores get work.
    half = -(-Bp // 2)
    tbp = min(tile_rows, max(8, ((half + 7) // 8) * 8))
    Bp_pad = ((Bp + tbp - 1) // tbp) * tbp
    grid = (Bp_pad // tbp,)

    x_flat = jnp.zeros((Bp_pad * 2,), jnp.float32).at[:B].set(x[:, 0])
    xp = x_flat.reshape(Bp_pad, 2)                 # row i = (x[2i], x[2i+1])

    flat = []
    for (w, b) in packed:
        flat += [w, b]

    flops = 2 * B * sum(fi * fo for fi, fo in LAYER_DIMS)
    transcendentals = 672 * B                      # tanh evals per original row
    weight_bytes = sum(int(w.size + b.size) * 4 for (w, b) in packed)
    bytes_accessed = 8 * B + weight_bytes

    kernel = functools.partial(polynomial_mlp_kernel, use_bf16_tanh=use_bf16_tanh)

    def call(single_buffer_weights):
        in_specs = [pl.BlockSpec((tbp, 2), lambda i: (i, 0))]
        for (w, b) in packed:
            for arr in (w, b):
                if single_buffer_weights:
                    # Constant index_map: the block never changes across the
                    # grid, so double-buffering the weights is wasted VMEM.
                    spec = pl.BlockSpec(arr.shape, lambda i: (0, 0),
                                        pipeline_mode=pl.Buffered(1))
                else:
                    spec = pl.BlockSpec(arr.shape, lambda i: (0, 0))
                in_specs.append(spec)
        out = pl.pallas_call(
            kernel,
            out_shape=jax.ShapeDtypeStruct((Bp_pad, 2), jnp.float32),
            grid=grid,
            in_specs=in_specs,
            out_specs=pl.BlockSpec((tbp, 2), lambda i: (i, 0)),
            compiler_params=pltpu.CompilerParams(
                dimension_semantics=("parallel",)),
            cost_estimate=pl.CostEstimate(
                flops=flops,
                transcendentals=transcendentals,
                bytes_accessed=bytes_accessed),
        )(xp, *flat)
        return jax.block_until_ready(out)

    if hasattr(pl, "Buffered"):
        try:
            out = call(True)
        except Exception:
            # Fall back gracefully if this jax version rejects pipeline_mode.
            out = call(False)
    else:
        out = call(False)

    return out.reshape(Bp_pad * 2, 1)[:B]


def reference_forward(x, params):
    """Pure-JAX reference mirroring the PyTorch forward (f32 throughout)."""
    def lin(h, i):
        w, b = params[i]
        return h @ w + b

    h = jnp.tanh(lin(x, 0)); y = h
    h = jnp.tanh(lin(h, 1)); h = jnp.tanh(lin(h, 2)); h = lin(h, 3)
    h = jnp.tanh(h + y); y = h
    h = jnp.tanh(lin(h, 4)); h = jnp.tanh(lin(h, 5)); h = lin(h, 6)
    h = jnp.tanh(h + y); y = h
    h = jnp.tanh(lin(h, 7)); h = jnp.tanh(lin(h, 8))
    h = jnp.tanh(h + y)
    h = jnp.tanh(lin(h, 9))
    return lin(h, 10)


if __name__ == "__main__":
    key = jax.random.PRNGKey(0)
    k_params, k_x1, k_x2 = jax.random.split(key, 3)
    params = init_params(k_params)

    # Small shapes: B=8, and B=19 to exercise the odd-batch / padding path and
    # (for B=19) a 2-step grid.
    for B, kx in ((8, k_x1), (19, k_x2)):
        x = jax.random.normal(kx, (B, 1), jnp.float32)
        ref = reference_forward(x, params)

        # Strict numerical check on the pure-f32 path (valid on every chip).
        out_f32 = jax.block_until_ready(
            polynomial_model_forward(x, params, use_bf16_tanh=False))
        assert out_f32.shape == (B, 1), out_f32.shape
        assert jnp.allclose(out_f32, ref, atol=2e-5, rtol=1e-4), (out_f32, ref)

        # Auto-tuned path (bf16 tanh on v6e/v7x): looser tolerance, since ten
        # bf16-rounded tanh layers accumulate ~1e-2 absolute error.
        out = jax.block_until_ready(polynomial_model_forward(x, params))
        assert out.shape == (B, 1), out.shape
        assert jnp.allclose(out, ref, atol=1e-1, rtol=0.0), (out, ref)

    print("KERNEL_OK")
</pallas_src>

<mosaic_0001>
module attributes {stable_mosaic.version = 11 : i64} {
  func.func @polynomial_mlp_kernel(%arg0: i32, %arg1: memref<8x2xf32, #tpu.memory_space<vmem>>, %arg2: memref<2x128xf32, #tpu.memory_space<vmem>>, %arg3: memref<1x128xf32, #tpu.memory_space<vmem>>, %arg4: memref<128x128xf32, #tpu.memory_space<vmem>>, %arg5: memref<1x128xf32, #tpu.memory_space<vmem>>, %arg6: memref<128x128xf32, #tpu.memory_space<vmem>>, %arg7: memref<1x128xf32, #tpu.memory_space<vmem>>, %arg8: memref<128x128xf32, #tpu.memory_space<vmem>>, %arg9: memref<1x128xf32, #tpu.memory_space<vmem>>, %arg10: memref<128x128xf32, #tpu.memory_space<vmem>>, %arg11: memref<1x128xf32, #tpu.memory_space<vmem>>, %arg12: memref<128x128xf32, #tpu.memory_space<vmem>>, %arg13: memref<1x128xf32, #tpu.memory_space<vmem>>, %arg14: memref<128x128xf32, #tpu.memory_space<vmem>>, %arg15: memref<1x128xf32, #tpu.memory_space<vmem>>, %arg16: memref<128x128xf32, #tpu.memory_space<vmem>>, %arg17: memref<1x128xf32, #tpu.memory_space<vmem>>, %arg18: memref<128x128xf32, #tpu.memory_space<vmem>>, %arg19: memref<1x128xf32, #tpu.memory_space<vmem>>, %arg20: memref<128x64xf32, #tpu.memory_space<vmem>>, %arg21: memref<1x64xf32, #tpu.memory_space<vmem>>, %arg22: memref<64x2xf32, #tpu.memory_space<vmem>>, %arg23: memref<1x2xf32, #tpu.memory_space<vmem>>, %arg24: memref<8x2xf32, #tpu.memory_space<vmem>>) attributes {dimension_semantics = [#tpu.dimension_semantics<parallel>], iteration_bounds = array<i64: 1>, scalar_prefetch = 0 : i64, scratch_operands = 0 : i64, tpu.core_type = #tpu.core_type<tc>, window_params = [{transform_indices = @transform_0, window_bounds = array<i64: 8, 2>}, {pipeline_mode = #tpu.pipeline_mode<synchronous>, transform_indices = @transform_1, window_bounds = array<i64: 2, 128>}, {pipeline_mode = #tpu.pipeline_mode<synchronous>, transform_indices = @transform_2, window_bounds = array<i64: 1, 128>}, {pipeline_mode = #tpu.pipeline_mode<synchronous>, transform_indices = @transform_3, window_bounds = array<i64: 128, 128>}, {pipeline_mode = #tpu.pipeline_mode<synchronous>, transform_indices = @transform_4, window_bounds = array<i64: 1, 128>}, {pipeline_mode = #tpu.pipeline_mode<synchronous>, transform_indices = @transform_5, window_bounds = array<i64: 128, 128>}, {pipeline_mode = #tpu.pipeline_mode<synchronous>, transform_indices = @transform_6, window_bounds = array<i64: 1, 128>}, {pipeline_mode = #tpu.pipeline_mode<synchronous>, transform_indices = @transform_7, window_bounds = array<i64: 128, 128>}, {pipeline_mode = #tpu.pipeline_mode<synchronous>, transform_indices = @transform_8, window_bounds = array<i64: 1, 128>}, {pipeline_mode = #tpu.pipeline_mode<synchronous>, transform_indices = @transform_9, window_bounds = array<i64: 128, 128>}, {pipeline_mode = #tpu.pipeline_mode<synchronous>, transform_indices = @transform_10, window_bounds = array<i64: 1, 128>}, {pipeline_mode = #tpu.pipeline_mode<synchronous>, transform_indices = @transform_11, window_bounds = array<i64: 128, 128>}, {pipeline_mode = #tpu.pipeline_mode<synchronous>, transform_indices = @transform_12, window_bounds = array<i64: 1, 128>}, {pipeline_mode = #tpu.pipeline_mode<synchronous>, transform_indices = @transform_13, window_bounds = array<i64: 128, 128>}, {pipeline_mode = #tpu.pipeline_mode<synchronous>, transform_indices = @transform_14, window_bounds = array<i64: 1, 128>}, {pipeline_mode = #tpu.pipeline_mode<synchronous>, transform_indices = @transform_15, window_bounds = array<i64: 128, 128>}, {pipeline_mode = #tpu.pipeline_mode<synchronous>, transform_indices = @transform_16, window_bounds = array<i64: 1, 128>}, {pipeline_mode = #tpu.pipeline_mode<synchronous>, transform_indices = @transform_17, window_bounds = array<i64: 128, 128>}, {pipeline_mode = #tpu.pipeline_mode<synchronous>, transform_indices = @transform_18, window_bounds = array<i64: 1, 128>}, {pipeline_mode = #tpu.pipeline_mode<synchronous>, transform_indices = @transform_19, window_bounds = array<i64: 128, 64>}, {pipeline_mode = #tpu.pipeline_mode<synchronous>, transform_indices = @transform_20, window_bounds = array<i64: 1, 64>}, {pipeline_mode = #tpu.pipeline_mode<synchronous>, transform_indices = @transform_21, window_bounds = array<i64: 64, 2>}, {pipeline_mode = #tpu.pipeline_mode<synchronous>, transform_indices = @transform_22, window_bounds = array<i64: 1, 2>}, {transform_indices = @transform_23, window_bounds = array<i64: 8, 2>}]} {
    %c0 = arith.constant 0 : index
    %c0_0 = arith.constant 0 : index
    %0 = vector.load %arg1[%c0, %c0_0] : memref<8x2xf32, #tpu.memory_space<vmem>>, vector<8x2xf32>
    %c0_1 = arith.constant 0 : index
    %c0_2 = arith.constant 0 : index
    %1 = vector.load %arg2[%c0_1, %c0_2] : memref<2x128xf32, #tpu.memory_space<vmem>>, vector<2x128xf32>
    %cst = arith.constant dense<0.000000e+00> : vector<8x128xf32>
    %2 = tpu.matmul %0, %1, %cst {dimension_numbers = #tpu.dot_dimension_numbers<[1], [0], [0], [1], [0, 0, 1, 1], [], []>} : vector<8x2xf32>, vector<2x128xf32>, vector<8x128xf32> -> vector<8x128xf32>
    %c0_3 = arith.constant 0 : index
    %c0_4 = arith.constant 0 : index
    %3 = vector.load %arg3[%c0_3, %c0_4] : memref<1x128xf32, #tpu.memory_space<vmem>>, vector<1x128xf32>
    %4 = vector.broadcast %3 : vector<1x128xf32> to vector<8x128xf32>
    %5 = arith.addf %2, %4 : vector<8x128xf32>
    %6 = math.tanh %5 : vector<8x128xf32>
    %c0_5 = arith.constant 0 : index
    %c0_6 = arith.constant 0 : index
    %7 = vector.load %arg4[%c0_5, %c0_6] : memref<128x128xf32, #tpu.memory_space<vmem>>, vector<128x128xf32>
    %cst_7 = arith.constant dense<0.000000e+00> : vector<8x128xf32>
    %8 = tpu.matmul %6, %7, %cst_7 {dimension_numbers = #tpu.dot_dimension_numbers<[1], [0], [0], [1], [0, 0, 1, 1], [], []>} : vector<8x128xf32>, vector<128x128xf32>, vector<8x128xf32> -> vector<8x128xf32>
    %c0_8 = arith.constant 0 : index
    %c0_9 = arith.constant 0 : index
    %9 = vector.load %arg5[%c0_8, %c0_9] : memref<1x128xf32, #tpu.memory_space<vmem>>, vector<1x128xf32>
    %10 = vector.broadcast %9 : vector<1x128xf32> to vector<8x128xf32>
    %11 = arith.addf %8, %10 : vector<8x128xf32>
    %12 = math.tanh %11 : vector<8x128xf32>
    %c0_10 = arith.constant 0 : index
    %c0_11 = arith.constant 0 : index
    %13 = vector.load %arg6[%c0_10, %c0_11] : memref<128x128xf32, #tpu.memory_space<vmem>>, vector<128x128xf32>
    %cst_12 = arith.constant dense<0.000000e+00> : vector<8x128xf32>
    %14 = tpu.matmul %12, %13, %cst_12 {dimension_numbers = #tpu.dot_dimension_numbers<[1], [0], [0], [1], [0, 0, 1, 1], [], []>} : vector<8x128xf32>, vector<128x128xf32>, vector<8x128xf32> -> vector<8x128xf32>
    %c0_13 = arith.constant 0 : index
    %c0_14 = arith.constant 0 : index
    %15 = vector.load %arg7[%c0_13, %c0_14] : memref<1x128xf32, #tpu.memory_space<vmem>>, vector<1x128xf32>
    %16 = vector.broadcast %15 : vector<1x128xf32> to vector<8x128xf32>
    %17 = arith.addf %14, %16 : vector<8x128xf32>
    %18 = math.tanh %17 : vector<8x128xf32>
    %c0_15 = arith.constant 0 : index
    %c0_16 = arith.constant 0 : index
    %19 = vector.load %arg8[%c0_15, %c0_16] : memref<128x128xf32, #tpu.memory_space<vmem>>, vector<128x128xf32>
    %cst_17 = arith.constant dense<0.000000e+00> : vector<8x128xf32>
    %20 = tpu.matmul %18, %19, %cst_17 {dimension_numbers = #tpu.dot_dimension_numbers<[1], [0], [0], [1], [0, 0, 1, 1], [], []>} : vector<8x128xf32>, vector<128x128xf32>, vector<8x128xf32> -> vector<8x128xf32>
    %c0_18 = arith.constant 0 : index
    %c0_19 = arith.constant 0 : index
    %21 = vector.load %arg9[%c0_18, %c0_19] : memref<1x128xf32, #tpu.memory_space<vmem>>, vector<1x128xf32>
    %22 = vector.broadcast %21 : vector<1x128xf32> to vector<8x128xf32>
    %23 = arith.addf %20, %22 : vector<8x128xf32>
    %24 = arith.addf %23, %6 : vector<8x128xf32>
    %25 = math.tanh %24 : vector<8x128xf32>
    %c0_20 = arith.constant 0 : index
    %c0_21 = arith.constant 0 : index
    %26 = vector.load %arg10[%c0_20, %c0_21] : memref<128x128xf32, #tpu.memory_space<vmem>>, vector<128x128xf32>
    %cst_22 = arith.constant dense<0.000000e+00> : vector<8x128xf32>
    %27 = tpu.matmul %25, %26, %cst_22 {dimension_numbers = #tpu.dot_dimension_numbers<[1], [0], [0], [1], [0, 0, 1, 1], [], []>} : vector<8x128xf32>, vector<128x128xf32>, vector<8x128xf32> -> vector<8x128xf32>
    %c0_23 = arith.constant 0 : index
    %c0_24 = arith.constant 0 : index
    %28 = vector.load %arg11[%c0_23, %c0_24] : memref<1x128xf32, #tpu.memory_space<vmem>>, vector<1x128xf32>
    %29 = vector.broadcast %28 : vector<1x128xf32> to vector<8x128xf32>
    %30 = arith.addf %27, %29 : vector<8x128xf32>
    %31 = math.tanh %30 : vector<8x128xf32>
    %c0_25 = arith.constant 0 : index
    %c0_26 = arith.constant 0 : index
    %32 = vector.load %arg12[%c0_25, %c0_26] : memref<128x128xf32, #tpu.memory_space<vmem>>, vector<128x128xf32>
    %cst_27 = arith.constant dense<0.000000e+00> : vector<8x128xf32>
    %33 = tpu.matmul %31, %32, %cst_27 {dimension_numbers = #tpu.dot_dimension_numbers<[1], [0], [0], [1], [0, 0, 1, 1], [], []>} : vector<8x128xf32>, vector<128x128xf32>, vector<8x128xf32> -> vector<8x128xf32>
    %c0_28 = arith.constant 0 : index
    %c0_29 = arith.constant 0 : index
    %34 = vector.load %arg13[%c0_28, %c0_29] : memref<1x128xf32, #tpu.memory_space<vmem>>, vector<1x128xf32>
    %35 = vector.broadcast %34 : vector<1x128xf32> to vector<8x128xf32>
    %36 = arith.addf %33, %35 : vector<8x128xf32>
    %37 = math.tanh %36 : vector<8x128xf32>
    %c0_30 = arith.constant 0 : index
    %c0_31 = arith.constant 0 : index
    %38 = vector.load %arg14[%c0_30, %c0_31] : memref<128x128xf32, #tpu.memory_space<vmem>>, vector<128x128xf32>
    %cst_32 = arith.constant dense<0.000000e+00> : vector<8x128xf32>
    %39 = tpu.matmul %37, %38, %cst_32 {dimension_numbers = #tpu.dot_dimension_numbers<[1], [0], [0], [1], [0, 0, 1, 1], [], []>} : vector<8x128xf32>, vector<128x128xf32>, vector<8x128xf32> -> vector<8x128xf32>
    %c0_33 = arith.constant 0 : index
    %c0_34 = arith.constant 0 : index
    %40 = vector.load %arg15[%c0_33, %c0_34] : memref<1x128xf32, #tpu.memory_space<vmem>>, vector<1x128xf32>
    %41 = vector.broadcast %40 : vector<1x128xf32> to vector<8x128xf32>
    %42 = arith.addf %39, %41 : vector<8x128xf32>
    %43 = arith.addf %42, %25 : vector<8x128xf32>
    %44 = math.tanh %43 : vector<8x128xf32>
    %c0_35 = arith.constant 0 : index
    %c0_36 = arith.constant 0 : index
    %45 = vector.load %arg16[%c0_35, %c0_36] : memref<128x128xf32, #tpu.memory_space<vmem>>, vector<128x128xf32>
    %cst_37 = arith.constant dense<0.000000e+00> : vector<8x128xf32>
    %46 = tpu.matmul %44, %45, %cst_37 {dimension_numbers = #tpu.dot_dimension_numbers<[1], [0], [0], [1], [0, 0, 1, 1], [], []>} : vector<8x128xf32>, vector<128x128xf32>, vector<8x128xf32> -> vector<8x128xf32>
    %c0_38 = arith.constant 0 : index
    %c0_39 = arith.constant 0 : index
    %47 = vector.load %arg17[%c0_38, %c0_39] : memref<1x128xf32, #tpu.memory_space<vmem>>, vector<1x128xf32>
    %48 = vector.broadcast %47 : vector<1x128xf32> to vector<8x128xf32>
    %49 = arith.addf %46, %48 : vector<8x128xf32>
    %50 = math.tanh %49 : vector<8x128xf32>
    %c0_40 = arith.constant 0 : index
    %c0_41 = arith.constant 0 : index
    %51 = vector.load %arg18[%c0_40, %c0_41] : memref<128x128xf32, #tpu.memory_space<vmem>>, vector<128x128xf32>
    %cst_42 = arith.constant dense<0.000000e+00> : vector<8x128xf32>
    %52 = tpu.matmul %50, %51, %cst_42 {dimension_numbers = #tpu.dot_dimension_numbers<[1], [0], [0], [1], [0, 0, 1, 1], [], []>} : vector<8x128xf32>, vector<128x128xf32>, vector<8x128xf32> -> vector<8x128xf32>
    %c0_43 = arith.constant 0 : index
    %c0_44 = arith.constant 0 : index
    %53 = vector.load %arg19[%c0_43, %c0_44] : memref<1x128xf32, #tpu.memory_space<vmem>>, vector<1x128xf32>
    %54 = vector.broadcast %53 : vector<1x128xf32> to vector<8x128xf32>
    %55 = arith.addf %52, %54 : vector<8x128xf32>
    %56 = math.tanh %55 : vector<8x128xf32>
    %57 = arith.addf %56, %44 : vector<8x128xf32>
    %58 = math.tanh %57 : vector<8x128xf32>
    %c0_45 = arith.constant 0 : index
    %c0_46 = arith.constant 0 : index
    %59 = vector.load %arg20[%c0_45, %c0_46] : memref<128x64xf32, #tpu.memory_space<vmem>>, vector<128x64xf32>
    %cst_47 = arith.constant dense<0.000000e+00> : vector<8x64xf32>
    %60 = tpu.matmul %58, %59, %cst_47 {dimension_numbers = #tpu.dot_dimension_numbers<[1], [0], [0], [1], [0, 0, 1, 1], [], []>} : vector<8x128xf32>, vector<128x64xf32>, vector<8x64xf32> -> vector<8x64xf32>
    %c0_48 = arith.constant 0 : index
    %c0_49 = arith.constant 0 : index
    %61 = vector.load %arg21[%c0_48, %c0_49] : memref<1x64xf32, #tpu.memory_space<vmem>>, vector<1x64xf32>
    %62 = vector.broadcast %61 : vector<1x64xf32> to vector<8x64xf32>
    %63 = arith.addf %60, %62 : vector<8x64xf32>
    %64 = math.tanh %63 : vector<8x64xf32>
    %c0_50 = arith.constant 0 : index
    %c0_51 = arith.constant 0 : index
    %65 = vector.load %arg22[%c0_50, %c0_51] : memref<64x2xf32, #tpu.memory_space<vmem>>, vector<64x2xf32>
    %cst_52 = arith.constant dense<0.000000e+00> : vector<8x2xf32>
    %66 = tpu.matmul %64, %65, %cst_52 {dimension_numbers = #tpu.dot_dimension_numbers<[1], [0], [0], [1], [0, 0, 1, 1], [], []>} : vector<8x64xf32>, vector<64x2xf32>, vector<8x2xf32> -> vector<8x2xf32>
    %c0_53 = arith.constant 0 : index
    %c0_54 = arith.constant 0 : index
    %67 = vector.load %arg23[%c0_53, %c0_54] : memref<1x2xf32, #tpu.memory_space<vmem>>, vector<1x2xf32>
    %68 = vector.broadcast %67 : vector<1x2xf32> to vector<8x2xf32>
    %69 = arith.addf %66, %68 : vector<8x2xf32>
    %c0_55 = arith.constant 0 : index
    %c0_56 = arith.constant 0 : index
    %70 = vector.load %arg24[%c0_55, %c0_56] : memref<8x2xf32, #tpu.memory_space<vmem>>, vector<8x2xf32>
    tpu.vector_store %arg24[%c0_55, %c0_56], %69 {strides = array<i32>} : memref<8x2xf32, #tpu.memory_space<vmem>>, vector<8x2xf32>,
    return
  }
  func.func @transform_0(%arg0: i32) -> (i32, i32) {
    %c0_i32 = arith.constant 0 : i32
    %c0_i32_0 = arith.constant 0 : i32
    return %arg0, %c0_i32 : i32, i32
  }
  func.func @transform_1(%arg0: i32) -> (i32, i32) {
    %c0_i32 = arith.constant 0 : i32
    %c0_i32_0 = arith.constant 0 : i32
    %c0_i32_1 = arith.constant 0 : i32
    return %c0_i32, %c0_i32_0 : i32, i32
  }
  func.func @transform_2(%arg0: i32) -> (i32, i32) {
    %c0_i32 = arith.constant 0 : i32
    %c0_i32_0 = arith.constant 0 : i32
    %c0_i32_1 = arith.constant 0 : i32
    return %c0_i32, %c0_i32_0 : i32, i32
  }
  func.func @transform_3(%arg0: i32) -> (i32, i32) {
    %c0_i32 = arith.constant 0 : i32
    %c0_i32_0 = arith.constant 0 : i32
    %c0_i32_1 = arith.constant 0 : i32
    return %c0_i32, %c0_i32_0 : i32, i32
  }
  func.func @transform_4(%arg0: i32) -> (i32, i32) {
    %c0_i32 = arith.constant 0 : i32
    %c0_i32_0 = arith.constant 0 : i32
    %c0_i32_1 = arith.constant 0 : i32
    return %c0_i32, %c0_i32_0 : i32, i32
  }
  func.func @transform_5(%arg0: i32) -> (i32, i32) {
    %c0_i32 = arith.constant 0 : i32
    %c0_i32_0 = arith.constant 0 : i32
    %c0_i32_1 = arith.constant 0 : i32
    return %c0_i32, %c0_i32_0 : i32, i32
  }
  func.func @transform_6(%arg0: i32) -> (i32, i32) {
    %c0_i32 = arith.constant 0 : i32
    %c0_i32_0 = arith.constant 0 : i32
    %c0_i32_1 = arith.constant 0 : i32
    return %c0_i32, %c0_i32_0 : i32, i32
  }
  func.func @transform_7(%arg0: i32) -> (i32, i32) {
    %c0_i32 = arith.constant 0 : i32
    %c0_i32_0 = arith.constant 0 : i32
    %c0_i32_1 = arith.constant 0 : i32
    return %c0_i32, %c0_i32_0 : i32, i32
  }
  func.func @transform_8(%arg0: i32) -> (i32, i32) {
    %c0_i32 = arith.constant 0 : i32
    %c0_i32_0 = arith.constant 0 : i32
    %c0_i32_1 = arith.constant 0 : i32
    return %c0_i32, %c0_i32_0 : i32, i32
  }
  func.func @transform_9(%arg0: i32) -> (i32, i32) {
    %c0_i32 = arith.constant 0 : i32
    %c0_i32_0 = arith.constant 0 : i32
    %c0_i32_1 = arith.constant 0 : i32
    return %c0_i32, %c0_i32_0 : i32, i32
  }
  func.func @transform_10(%arg0: i32) -> (i32, i32) {
    %c0_i32 = arith.constant 0 : i32
    %c0_i32_0 = arith.constant 0 : i32
    %c0_i32_1 = arith.constant 0 : i32
    return %c0_i32, %c0_i32_0 : i32, i32
  }
  func.func @transform_11(%arg0: i32) -> (i32, i32) {
    %c0_i32 = arith.constant 0 : i32
    %c0_i32_0 = arith.constant 0 : i32
    %c0_i32_1 = arith.constant 0 : i32
    return %c0_i32, %c0_i32_0 : i32, i32
  }
  func.func @transform_12(%arg0: i32) -> (i32, i32) {
    %c0_i32 = arith.constant 0 : i32
    %c0_i32_0 = arith.constant 0 : i32
    %c0_i32_1 = arith.constant 0 : i32
    return %c0_i32, %c0_i32_0 : i32, i32
  }
  func.func @transform_13(%arg0: i32) -> (i32, i32) {
    %c0_i32 = arith.constant 0 : i32
    %c0_i32_0 = arith.constant 0 : i32
    %c0_i32_1 = arith.constant 0 : i32
    return %c0_i32, %c0_i32_0 : i32, i32
  }
  func.func @transform_14(%arg0: i32) -> (i32, i32) {
    %c0_i32 = arith.constant 0 : i32
    %c0_i32_0 = arith.constant 0 : i32
    %c0_i32_1 = arith.constant 0 : i32
    return %c0_i32, %c0_i32_0 : i32, i32
  }
  func.func @transform_15(%arg0: i32) -> (i32, i32) {
    %c0_i32 = arith.constant 0 : i32
    %c0_i32_0 = arith.constant 0 : i32
    %c0_i32_1 = arith.constant 0 : i32
    return %c0_i32, %c0_i32_0 : i32, i32
  }
  func.func @transform_16(%arg0: i32) -> (i32, i32) {
    %c0_i32 = arith.constant 0 : i32
    %c0_i32_0 = arith.constant 0 : i32
    %c0_i32_1 = arith.constant 0 : i32
    return %c0_i32, %c0_i32_0 : i32, i32
  }
  func.func @transform_17(%arg0: i32) -> (i32, i32) {
    %c0_i32 = arith.constant 0 : i32
    %c0_i32_0 = arith.constant 0 : i32
    %c0_i32_1 = arith.constant 0 : i32
    return %c0_i32, %c0_i32_0 : i32, i32
  }
  func.func @transform_18(%arg0: i32) -> (i32, i32) {
    %c0_i32 = arith.constant 0 : i32
    %c0_i32_0 = arith.constant 0 : i32
    %c0_i32_1 = arith.constant 0 : i32
    return %c0_i32, %c0_i32_0 : i32, i32
  }
  func.func @transform_19(%arg0: i32) -> (i32, i32) {
    %c0_i32 = arith.constant 0 : i32
    %c0_i32_0 = arith.constant 0 : i32
    %c0_i32_1 = arith.constant 0 : i32
    return %c0_i32, %c0_i32_0 : i32, i32
  }
  func.func @transform_20(%arg0: i32) -> (i32, i32) {
    %c0_i32 = arith.constant 0 : i32
    %c0_i32_0 = arith.constant 0 : i32
    %c0_i32_1 = arith.constant 0 : i32
    return %c0_i32, %c0_i32_0 : i32, i32
  }
  func.func @transform_21(%arg0: i32) -> (i32, i32) {
    %c0_i32 = arith.constant 0 : i32
    %c0_i32_0 = arith.constant 0 : i32
    %c0_i32_1 = arith.constant 0 : i32
    return %c0_i32, %c0_i32_0 : i32, i32
  }
  func.func @transform_22(%arg0: i32) -> (i32, i32) {
    %c0_i32 = arith.constant 0 : i32
    %c0_i32_0 = arith.constant 0 : i32
    %c0_i32_1 = arith.constant 0 : i32
    return %c0_i32, %c0_i32_0 : i32, i32
  }
  func.func @transform_23(%arg0: i32) -> (i32, i32) {
    %c0_i32 = arith.constant 0 : i32
    %c0_i32_0 = arith.constant 0 : i32
    return %arg0, %c0_i32 : i32, i32
  }
}

module attributes {stable_mosaic.version = 11 : i64} {
  func.func @polynomial_mlp_kernel(%arg0: i32, %arg1: memref<8x2xf32, #tpu.memory_space<vmem>>, %arg2: memref<2x128xf32, #tpu.memory_space<vmem>>, %arg3: memref<1x128xf32, #tpu.memory_space<vmem>>, %arg4: memref<128x128xf32, #tpu.memory_space<vmem>>, %arg5: memref<1x128xf32, #tpu.memory_space<vmem>>, %arg6: memref<128x128xf32, #tpu.memory_space<vmem>>, %arg7: memref<1x128xf32, #tpu.memory_space<vmem>>, %arg8: memref<128x128xf32, #tpu.memory_space<vmem>>, %arg9: memref<1x128xf32, #tpu.memory_space<vmem>>, %arg10: memref<128x128xf32, #tpu.memory_space<vmem>>, %arg11: memref<1x128xf32, #tpu.memory_space<vmem>>, %arg12: memref<128x128xf32, #tpu.memory_space<vmem>>, %arg13: memref<1x128xf32, #tpu.memory_space<vmem>>, %arg14: memref<128x128xf32, #tpu.memory_space<vmem>>, %arg15: memref<1x128xf32, #tpu.memory_space<vmem>>, %arg16: memref<128x128xf32, #tpu.memory_space<vmem>>, %arg17: memref<1x128xf32, #tpu.memory_space<vmem>>, %arg18: memref<128x128xf32, #tpu.memory_space<vmem>>, %arg19: memref<1x128xf32, #tpu.memory_space<vmem>>, %arg20: memref<128x64xf32, #tpu.memory_space<vmem>>, %arg21: memref<1x64xf32, #tpu.memory_space<vmem>>, %arg22: memref<64x2xf32, #tpu.memory_space<vmem>>, %arg23: memref<1x2xf32, #tpu.memory_space<vmem>>, %arg24: memref<8x2xf32, #tpu.memory_space<vmem>>) attributes {dimension_semantics = [#tpu.dimension_semantics<parallel>], iteration_bounds = array<i64: 1>, scalar_prefetch = 0 : i64, scratch_operands = 0 : i64, tpu.core_type = #tpu.core_type<tc>, window_params = [{transform_indices = @transform_0, window_bounds = array<i64: 8, 2>}, {pipeline_mode = #tpu.pipeline_mode<synchronous>, transform_indices = @transform_1, window_bounds = array<i64: 2, 128>}, {pipeline_mode = #tpu.pipeline_mode<synchronous>, transform_indices = @transform_2, window_bounds = array<i64: 1, 128>}, {pipeline_mode = #tpu.pipeline_mode<synchronous>, transform_indices = @transform_3, window_bounds = array<i64: 128, 128>}, {pipeline_mode = #tpu.pipeline_mode<synchronous>, transform_indices = @transform_4, window_bounds = array<i64: 1, 128>}, {pipeline_mode = #tpu.pipeline_mode<synchronous>, transform_indices = @transform_5, window_bounds = array<i64: 128, 128>}, {pipeline_mode = #tpu.pipeline_mode<synchronous>, transform_indices = @transform_6, window_bounds = array<i64: 1, 128>}, {pipeline_mode = #tpu.pipeline_mode<synchronous>, transform_indices = @transform_7, window_bounds = array<i64: 128, 128>}, {pipeline_mode = #tpu.pipeline_mode<synchronous>, transform_indices = @transform_8, window_bounds = array<i64: 1, 128>}, {pipeline_mode = #tpu.pipeline_mode<synchronous>, transform_indices = @transform_9, window_bounds = array<i64: 128, 128>}, {pipeline_mode = #tpu.pipeline_mode<synchronous>, transform_indices = @transform_10, window_bounds = array<i64: 1, 128>}, {pipeline_mode = #tpu.pipeline_mode<synchronous>, transform_indices = @transform_11, window_bounds = array<i64: 128, 128>}, {pipeline_mode = #tpu.pipeline_mode<synchronous>, transform_indices = @transform_12, window_bounds = array<i64: 1, 128>}, {pipeline_mode = #tpu.pipeline_mode<synchronous>, transform_indices = @transform_13, window_bounds = array<i64: 128, 128>}, {pipeline_mode = #tpu.pipeline_mode<synchronous>, transform_indices = @transform_14, window_bounds = array<i64: 1, 128>}, {pipeline_mode = #tpu.pipeline_mode<synchronous>, transform_indices = @transform_15, window_bounds = array<i64: 128, 128>}, {pipeline_mode = #tpu.pipeline_mode<synchronous>, transform_indices = @transform_16, window_bounds = array<i64: 1, 128>}, {pipeline_mode = #tpu.pipeline_mode<synchronous>, transform_indices = @transform_17, window_bounds = array<i64: 128, 128>}, {pipeline_mode = #tpu.pipeline_mode<synchronous>, transform_indices = @transform_18, window_bounds = array<i64: 1, 128>}, {pipeline_mode = #tpu.pipeline_mode<synchronous>, transform_indices = @transform_19, window_bounds = array<i64: 128, 64>}, {pipeline_mode = #tpu.pipeline_mode<synchronous>, transform_indices = @transform_20, window_bounds = array<i64: 1, 64>}, {pipeline_mode = #tpu.pipeline_mode<synchronous>, transform_indices = @transform_21, window_bounds = array<i64: 64, 2>}, {pipeline_mode = #tpu.pipeline_mode<synchronous>, transform_indices = @transform_22, window_bounds = array<i64: 1, 2>}, {transform_indices = @transform_23, window_bounds = array<i64: 8, 2>}]} {
    %c0 = arith.constant 0 : index
    %c0_0 = arith.constant 0 : index
    %0 = vector.load %arg1[%c0, %c0_0] : memref<8x2xf32, #tpu.memory_space<vmem>>, vector<8x2xf32>
    %c0_1 = arith.constant 0 : index
    %c0_2 = arith.constant 0 : index
    %1 = vector.load %arg2[%c0_1, %c0_2] : memref<2x128xf32, #tpu.memory_space<vmem>>, vector<2x128xf32>
    %cst = arith.constant dense<0.000000e+00> : vector<8x128xf32>
    %2 = tpu.matmul %0, %1, %cst {dimension_numbers = #tpu.dot_dimension_numbers<[1], [0], [0], [1], [0, 0, 1, 1], [], []>} : vector<8x2xf32>, vector<2x128xf32>, vector<8x128xf32> -> vector<8x128xf32>
    %c0_3 = arith.constant 0 : index
    %c0_4 = arith.constant 0 : index
    %3 = vector.load %arg3[%c0_3, %c0_4] : memref<1x128xf32, #tpu.memory_space<vmem>>, vector<1x128xf32>
    %4 = vector.broadcast %3 : vector<1x128xf32> to vector<8x128xf32>
    %5 = arith.addf %2, %4 : vector<8x128xf32>
    %6 = math.tanh %5 : vector<8x128xf32>
    %c0_5 = arith.constant 0 : index
    %c0_6 = arith.constant 0 : index
    %7 = vector.load %arg4[%c0_5, %c0_6] : memref<128x128xf32, #tpu.memory_space<vmem>>, vector<128x128xf32>
    %cst_7 = arith.constant dense<0.000000e+00> : vector<8x128xf32>
    %8 = tpu.matmul %6, %7, %cst_7 {dimension_numbers = #tpu.dot_dimension_numbers<[1], [0], [0], [1], [0, 0, 1, 1], [], []>} : vector<8x128xf32>, vector<128x128xf32>, vector<8x128xf32> -> vector<8x128xf32>
    %c0_8 = arith.constant 0 : index
    %c0_9 = arith.constant 0 : index
    %9 = vector.load %arg5[%c0_8, %c0_9] : memref<1x128xf32, #tpu.memory_space<vmem>>, vector<1x128xf32>
    %10 = vector.broadcast %9 : vector<1x128xf32> to vector<8x128xf32>
    %11 = arith.addf %8, %10 : vector<8x128xf32>
    %12 = math.tanh %11 : vector<8x128xf32>
    %c0_10 = arith.constant 0 : index
    %c0_11 = arith.constant 0 : index
    %13 = vector.load %arg6[%c0_10, %c0_11] : memref<128x128xf32, #tpu.memory_space<vmem>>, vector<128x128xf32>
    %cst_12 = arith.constant dense<0.000000e+00> : vector<8x128xf32>
    %14 = tpu.matmul %12, %13, %cst_12 {dimension_numbers = #tpu.dot_dimension_numbers<[1], [0], [0], [1], [0, 0, 1, 1], [], []>} : vector<8x128xf32>, vector<128x128xf32>, vector<8x128xf32> -> vector<8x128xf32>
    %c0_13 = arith.constant 0 : index
    %c0_14 = arith.constant 0 : index
    %15 = vector.load %arg7[%c0_13, %c0_14] : memref<1x128xf32, #tpu.memory_space<vmem>>, vector<1x128xf32>
    %16 = vector.broadcast %15 : vector<1x128xf32> to vector<8x128xf32>
    %17 = arith.addf %14, %16 : vector<8x128xf32>
    %18 = math.tanh %17 : vector<8x128xf32>
    %c0_15 = arith.constant 0 : index
    %c0_16 = arith.constant 0 : index
    %19 = vector.load %arg8[%c0_15, %c0_16] : memref<128x128xf32, #tpu.memory_space<vmem>>, vector<128x128xf32>
    %cst_17 = arith.constant dense<0.000000e+00> : vector<8x128xf32>
    %20 = tpu.matmul %18, %19, %cst_17 {dimension_numbers = #tpu.dot_dimension_numbers<[1], [0], [0], [1], [0, 0, 1, 1], [], []>} : vector<8x128xf32>, vector<128x128xf32>, vector<8x128xf32> -> vector<8x128xf32>
    %c0_18 = arith.constant 0 : index
    %c0_19 = arith.constant 0 : index
    %21 = vector.load %arg9[%c0_18, %c0_19] : memref<1x128xf32, #tpu.memory_space<vmem>>, vector<1x128xf32>
    %22 = vector.broadcast %21 : vector<1x128xf32> to vector<8x128xf32>
    %23 = arith.addf %20, %22 : vector<8x128xf32>
    %24 = arith.addf %23, %6 : vector<8x128xf32>
    %25 = math.tanh %24 : vector<8x128xf32>
    %c0_20 = arith.constant 0 : index
    %c0_21 = arith.constant 0 : index
    %26 = vector.load %arg10[%c0_20, %c0_21] : memref<128x128xf32, #tpu.memory_space<vmem>>, vector<128x128xf32>
    %cst_22 = arith.constant dense<0.000000e+00> : vector<8x128xf32>
    %27 = tpu.matmul %25, %26, %cst_22 {dimension_numbers = #tpu.dot_dimension_numbers<[1], [0], [0], [1], [0, 0, 1, 1], [], []>} : vector<8x128xf32>, vector<128x128xf32>, vector<8x128xf32> -> vector<8x128xf32>
    %c0_23 = arith.constant 0 : index
    %c0_24 = arith.constant 0 : index
    %28 = vector.load %arg11[%c0_23, %c0_24] : memref<1x128xf32, #tpu.memory_space<vmem>>, vector<1x128xf32>
    %29 = vector.broadcast %28 : vector<1x128xf32> to vector<8x128xf32>
    %30 = arith.addf %27, %29 : vector<8x128xf32>
    %31 = math.tanh %30 : vector<8x128xf32>
    %c0_25 = arith.constant 0 : index
    %c0_26 = arith.constant 0 : index
    %32 = vector.load %arg12[%c0_25, %c0_26] : memref<128x128xf32, #tpu.memory_space<vmem>>, vector<128x128xf32>
    %cst_27 = arith.constant dense<0.000000e+00> : vector<8x128xf32>
    %33 = tpu.matmul %31, %32, %cst_27 {dimension_numbers = #tpu.dot_dimension_numbers<[1], [0], [0], [1], [0, 0, 1, 1], [], []>} : vector<8x128xf32>, vector<128x128xf32>, vector<8x128xf32> -> vector<8x128xf32>
    %c0_28 = arith.constant 0 : index
    %c0_29 = arith.constant 0 : index
    %34 = vector.load %arg13[%c0_28, %c0_29] : memref<1x128xf32, #tpu.memory_space<vmem>>, vector<1x128xf32>
    %35 = vector.broadcast %34 : vector<1x128xf32> to vector<8x128xf32>
    %36 = arith.addf %33, %35 : vector<8x128xf32>
    %37 = math.tanh %36 : vector<8x128xf32>
    %c0_30 = arith.constant 0 : index
    %c0_31 = arith.constant 0 : index
    %38 = vector.load %arg14[%c0_30, %c0_31] : memref<128x128xf32, #tpu.memory_space<vmem>>, vector<128x128xf32>
    %cst_32 = arith.constant dense<0.000000e+00> : vector<8x128xf32>
    %39 = tpu.matmul %37, %38, %cst_32 {dimension_numbers = #tpu.dot_dimension_numbers<[1], [0], [0], [1], [0, 0, 1, 1], [], []>} : vector<8x128xf32>, vector<128x128xf32>, vector<8x128xf32> -> vector<8x128xf32>
    %c0_33 = arith.constant 0 : index
    %c0_34 = arith.constant 0 : index
    %40 = vector.load %arg15[%c0_33, %c0_34] : memref<1x128xf32, #tpu.memory_space<vmem>>, vector<1x128xf32>
    %41 = vector.broadcast %40 : vector<1x128xf32> to vector<8x128xf32>
    %42 = arith.addf %39, %41 : vector<8x128xf32>
    %43 = arith.addf %42, %25 : vector<8x128xf32>
    %44 = math.tanh %43 : vector<8x128xf32>
    %c0_35 = arith.constant 0 : index
    %c0_36 = arith.constant 0 : index
    %45 = vector.load %arg16[%c0_35, %c0_36] : memref<128x128xf32, #tpu.memory_space<vmem>>, vector<128x128xf32>
    %cst_37 = arith.constant dense<0.000000e+00> : vector<8x128xf32>
    %46 = tpu.matmul %44, %45, %cst_37 {dimension_numbers = #tpu.dot_dimension_numbers<[1], [0], [0], [1], [0, 0, 1, 1], [], []>} : vector<8x128xf32>, vector<128x128xf32>, vector<8x128xf32> -> vector<8x128xf32>
    %c0_38 = arith.constant 0 : index
    %c0_39 = arith.constant 0 : index
    %47 = vector.load %arg17[%c0_38, %c0_39] : memref<1x128xf32, #tpu.memory_space<vmem>>, vector<1x128xf32>
    %48 = vector.broadcast %47 : vector<1x128xf32> to vector<8x128xf32>
    %49 = arith.addf %46, %48 : vector<8x128xf32>
    %50 = math.tanh %49 : vector<8x128xf32>
    %c0_40 = arith.constant 0 : index
    %c0_41 = arith.constant 0 : index
    %51 = vector.load %arg18[%c0_40, %c0_41] : memref<128x128xf32, #tpu.memory_space<vmem>>, vector<128x128xf32>
    %cst_42 = arith.constant dense<0.000000e+00> : vector<8x128xf32>
    %52 = tpu.matmul %50, %51, %cst_42 {dimension_numbers = #tpu.dot_dimension_numbers<[1], [0], [0], [1], [0, 0, 1, 1], [], []>} : vector<8x128xf32>, vector<128x128xf32>, vector<8x128xf32> -> vector<8x128xf32>
    %c0_43 = arith.constant 0 : index
    %c0_44 = arith.constant 0 : index
    %53 = vector.load %arg19[%c0_43, %c0_44] : memref<1x128xf32, #tpu.memory_space<vmem>>, vector<1x128xf32>
    %54 = vector.broadcast %53 : vector<1x128xf32> to vector<8x128xf32>
    %55 = arith.addf %52, %54 : vector<8x128xf32>
    %56 = math.tanh %55 : vector<8x128xf32>
    %57 = arith.addf %56, %44 : vector<8x128xf32>
    %58 = math.tanh %57 : vector<8x128xf32>
    %c0_45 = arith.constant 0 : index
    %c0_46 = arith.constant 0 : index
    %59 = vector.load %arg20[%c0_45, %c0_46] : memref<128x64xf32, #tpu.memory_space<vmem>>, vector<128x64xf32>
    %cst_47 = arith.constant dense<0.000000e+00> : vector<8x64xf32>
    %60 = tpu.matmul %58, %59, %cst_47 {dimension_numbers = #tpu.dot_dimension_numbers<[1], [0], [0], [1], [0, 0, 1, 1], [], []>} : vector<8x128xf32>, vector<128x64xf32>, vector<8x64xf32> -> vector<8x64xf32>
    %c0_48 = arith.constant 0 : index
    %c0_49 = arith.constant 0 : index
    %61 = vector.load %arg21[%c0_48, %c0_49] : memref<1x64xf32, #tpu.memory_space<vmem>>, vector<1x64xf32>
    %62 = vector.broadcast %61 : vector<1x64xf32> to vector<8x64xf32>
    %63 = arith.addf %60, %62 : vector<8x64xf32>
    %64 = math.tanh %63 : vector<8x64xf32>
    %c0_50 = arith.constant 0 : index
    %c0_51 = arith.constant 0 : index
    %65 = vector.load %arg22[%c0_50, %c0_51] : memref<64x2xf32, #tpu.memory_space<vmem>>, vector<64x2xf32>
    %cst_52 = arith.constant dense<0.000000e+00> : vector<8x2xf32>
    %66 = tpu.matmul %64, %65, %cst_52 {dimension_numbers = #tpu.dot_dimension_numbers<[1], [0], [0], [1], [0, 0, 1, 1], [], []>} : vector<8x64xf32>, vector<64x2xf32>, vector<8x2xf32> -> vector<8x2xf32>
    %c0_53 = arith.constant 0 : index
    %c0_54 = arith.constant 0 : index
    %67 = vector.load %arg23[%c0_53, %c0_54] : memref<1x2xf32, #tpu.memory_space<vmem>>, vector<1x2xf32>
    %68 = vector.broadcast %67 : vector<1x2xf32> to vector<8x2xf32>
    %69 = arith.addf %66, %68 : vector<8x2xf32>
    %c0_55 = arith.constant 0 : index
    %c0_56 = arith.constant 0 : index
    %70 = vector.load %arg24[%c0_55, %c0_56] : memref<8x2xf32, #tpu.memory_space<vmem>>, vector<8x2xf32>
    tpu.vector_store %arg24[%c0_55, %c0_56], %69 {strides = array<i32>} : memref<8x2xf32, #tpu.memory_space<vmem>>, vector<8x2xf32>,
    return
  }
  func.func @transform_0(%arg0: i32) -> (i32, i32) {
    %c0_i32 = arith.constant 0 : i32
    %c0_i32_0 = arith.constant 0 : i32
    return %arg0, %c0_i32 : i32, i32
  }
  func.func @transform_1(%arg0: i32) -> (i32, i32) {
    %c0_i32 = arith.constant 0 : i32
    %c0_i32_0 = arith.constant 0 : i32
    %c0_i32_1 = arith.constant 0 : i32
    return %c0_i32, %c0_i32_0 : i32, i32
  }
  func.func @transform_2(%arg0: i32) -> (i32, i32) {
    %c0_i32 = arith.constant 0 : i32
    %c0_i32_0 = arith.constant 0 : i32
    %c0_i32_1 = arith.constant 0 : i32
    return %c0_i32, %c0_i32_0 : i32, i32
  }
  func.func @transform_3(%arg0: i32) -> (i32, i32) {
    %c0_i32 = arith.constant 0 : i32
    %c0_i32_0 = arith.constant 0 : i32
    %c0_i32_1 = arith.constant 0 : i32
    return %c0_i32, %c0_i32_0 : i32, i32
  }
  func.func @transform_4(%arg0: i32) -> (i32, i32) {
    %c0_i32 = arith.constant 0 : i32
    %c0_i32_0 = arith.constant 0 : i32
    %c0_i32_1 = arith.constant 0 : i32
    return %c0_i32, %c0_i32_0 : i32, i32
  }
  func.func @transform_5(%arg0: i32) -> (i32, i32) {
    %c0_i32 = arith.constant 0 : i32
    %c0_i32_0 = arith.constant 0 : i32
    %c0_i32_1 = arith.constant 0 : i32
    return %c0_i32, %c0_i32_0 : i32, i32
  }
  func.func @transform_6(%arg0: i32) -> (i32, i32) {
    %c0_i32 = arith.constant 0 : i32
    %c0_i32_0 = arith.constant 0 : i32
    %c0_i32_1 = arith.constant 0 : i32
    return %c0_i32, %c0_i32_0 : i32, i32
  }
  func.func @transform_7(%arg0: i32) -> (i32, i32) {
    %c0_i32 = arith.constant 0 : i32
    %c0_i32_0 = arith.constant 0 : i32
    %c0_i32_1 = arith.constant 0 : i32
    return %c0_i32, %c0_i32_0 : i32, i32
  }
  func.func @transform_8(%arg0: i32) -> (i32, i32) {
    %c0_i32 = arith.constant 0 : i32
    %c0_i32_0 = arith.constant 0 : i32
    %c0_i32_1 = arith.constant 0 : i32
    return %c0_i32, %c0_i32_0 : i32, i32
  }
  func.func @transform_9(%arg0: i32) -> (i32, i32) {
    %c0_i32 = arith.constant 0 : i32
    %c0_i32_0 = arith.constant 0 : i32
    %c0_i32_1 = arith.constant 0 : i32
    return %c0_i32, %c0_i32_0 : i32, i32
  }
  func.func @transform_10(%arg0: i32) -> (i32, i32) {
    %c0_i32 = arith.constant 0 : i32
    %c0_i32_0 = arith.constant 0 : i32
    %c0_i32_1 = arith.constant 0 : i32
    return %c0_i32, %c0_i32_0 : i32, i32
  }
  func.func @transform_11(%arg0: i32) -> (i32, i32) {
    %c0_i32 = arith.constant 0 : i32
    %c0_i32_0 = arith.constant 0 : i32
    %c0_i32_1 = arith.constant 0 : i32
    return %c0_i32, %c0_i32_0 : i32, i32
  }
  func.func @transform_12(%arg0: i32) -> (i32, i32) {
    %c0_i32 = arith.constant 0 : i32
    %c0_i32_0 = arith.constant 0 : i32
    %c0_i32_1 = arith.constant 0 : i32
    return %c0_i32, %c0_i32_0 : i32, i32
  }
  func.func @transform_13(%arg0: i32) -> (i32, i32) {
    %c0_i32 = arith.constant 0 : i32
    %c0_i32_0 = arith.constant 0 : i32
    %c0_i32_1 = arith.constant 0 : i32
    return %c0_i32, %c0_i32_0 : i32, i32
  }
  func.func @transform_14(%arg0: i32) -> (i32, i32) {
    %c0_i32 = arith.constant 0 : i32
    %c0_i32_0 = arith.constant 0 : i32
    %c0_i32_1 = arith.constant 0 : i32
    return %c0_i32, %c0_i32_0 : i32, i32
  }
  func.func @transform_15(%arg0: i32) -> (i32, i32) {
    %c0_i32 = arith.constant 0 : i32
    %c0_i32_0 = arith.constant 0 : i32
    %c0_i32_1 = arith.constant 0 : i32
    return %c0_i32, %c0_i32_0 : i32, i32
  }
  func.func @transform_16(%arg0: i32) -> (i32, i32) {
    %c0_i32 = arith.constant 0 : i32
    %c0_i32_0 = arith.constant 0 : i32
    %c0_i32_1 = arith.constant 0 : i32
    return %c0_i32, %c0_i32_0 : i32, i32
  }
  func.func @transform_17(%arg0: i32) -> (i32, i32) {
    %c0_i32 = arith.constant 0 : i32
    %c0_i32_0 = arith.constant 0 : i32
    %c0_i32_1 = arith.constant 0 : i32
    return %c0_i32, %c0_i32_0 : i32, i32
  }
  func.func @transform_18(%arg0: i32) -> (i32, i32) {
    %c0_i32 = arith.constant 0 : i32
    %c0_i32_0 = arith.constant 0 : i32
    %c0_i32_1 = arith.constant 0 : i32
    return %c0_i32, %c0_i32_0 : i32, i32
  }
  func.func @transform_19(%arg0: i32) -> (i32, i32) {
    %c0_i32 = arith.constant 0 : i32
    %c0_i32_0 = arith.constant 0 : i32
    %c0_i32_1 = arith.constant 0 : i32
    return %c0_i32, %c0_i32_0 : i32, i32
  }
  func.func @transform_20(%arg0: i32) -> (i32, i32) {
    %c0_i32 = arith.constant 0 : i32
    %c0_i32_0 = arith.constant 0 : i32
    %c0_i32_1 = arith.constant 0 : i32
    return %c0_i32, %c0_i32_0 : i32, i32
  }
  func.func @transform_21(%arg0: i32) -> (i32, i32) {
    %c0_i32 = arith.constant 0 : i32
    %c0_i32_0 = arith.constant 0 : i32
    %c0_i32_1 = arith.constant 0 : i32
    return %c0_i32, %c0_i32_0 : i32, i32
  }
  func.func @transform_22(%arg0: i32) -> (i32, i32) {
    %c0_i32 = arith.constant 0 : i32
    %c0_i32_0 = arith.constant 0 : i32
    %c0_i32_1 = arith.constant 0 : i32
    return %c0_i32, %c0_i32_0 : i32, i32
  }
  func.func @transform_23(%arg0: i32) -> (i32, i32) {
    %c0_i32 = arith.constant 0 : i32
    %c0_i32_0 = arith.constant 0 : i32
    return %arg0, %c0_i32 : i32, i32
  }
}

</mosaic_0001>

<bundles_post_ra>
// kernel: tpu_custom_call.1
= control target key start
LH: loop header
LB: loop body
LE: loop exit
PB: predicated region body
PF: predicated region fallthrough
CT: control target
= control target key end

     0   :  { %s2434_s0 = inlined_call_operand.vmem [shape: f32[8,2], index: 0, kind: input, shape index: {}]   ;;  %s2435_s1 = inlined_call_operand.vmem [shape: f32[2,128], index: 1, kind: input, shape index: {}]   ;;  %s2436_s2 = inlined_call_operand.vmem [shape: f32[1,128], index: 2, kind: input, shape index: {}]   ;;  %s2437_s3 = inlined_call_operand.vmem [shape: f32[128,128], index: 3, kind: input, shape index: {}]   ;;  %s2438_s4 = inlined_call_operand.vmem [shape: f32[1,128], index: 4, kind: input, shape index: {}]   ;;  %s2439_s5 = inlined_call_operand.vmem [shape: f32[128,128], index: 5, kind: input, shape index: {}]   ;;  %s2440_s6 = inlined_call_operand.vmem [shape: f32[1,128], index: 6, kind: input, shape index: {}]   ;;  %s2441_s7 = inlined_call_operand.hbm [shape: f32[128,128], index: 7, kind: input, shape index: {}]   ;;  %s2442_s8 = inlined_call_operand.vmem [shape: f32[1,128], index: 8, kind: input, shape index: {}]   ;;  %s2443_s9 = inlined_call_operand.hbm [shape: f32[128,128], index: 9, kind: input, shape index: {}]   ;;  %s2444_s10 = inlined_call_operand.vmem [shape: f32[1,128], index: 10, kind: input, shape index: {}]   ;;  %s2445_s11 = inlined_call_operand.hbm [shape: f32[128,128], index: 11, kind: input, shape index: {}]   ;;  %s2446_s12 = inlined_call_operand.vmem [shape: f32[1,128], index: 12, kind: input, shape index: {}]   ;;  %s2447_s13 = inlined_call_operand.hbm [shape: f32[128,128], index: 13, kind: input, shape index: {}]   ;;  %s2448_s14 = inlined_call_operand.vmem [shape: f32[1,128], index: 14, kind: input, shape index: {}]   ;;  %s2449_s15 = inlined_call_operand.hbm [shape: f32[128,128], index: 15, kind: input, shape index: {}]   ;;  %s2450_s16 = inlined_call_operand.vmem [shape: f32[1,128], index: 16, kind: input, shape index: {}]   ;;  %s2451_s17 = inlined_call_operand.hbm [shape: f32[128,128], index: 17, kind: input, shape index: {}]   ;;  %s2452_s18 = inlined_call_operand.vmem [shape: f32[1,128], index: 18, kind: input, shape index: {}]   ;;  %s2453_s19 = inlined_call_operand.vmem [shape: f32[128,64], index: 19, kind: input, shape index: {}]   ;;  %s2454_s20 = inlined_call_operand.vmem [shape: f32[1,64], index: 20, kind: input, shape index: {}]   ;;  %s2455_s21 = inlined_call_operand.vmem [shape: f32[64,2], index: 21, kind: input, shape index: {}]   ;;  %s2456_s22 = inlined_call_operand.vmem [shape: f32[1,2], index: 22, kind: input, shape index: {}]   ;;  %s2457_s23 = inlined_call_operand.vmem [shape: f32[8,2], index: 23, kind: output, shape index: {}]  }
   0x1   :  { %2460 = sst [smem:[#allocation16_spill]] %s2434_s0 }
   0x2   :  { %2461 = sst [smem:[#allocation17_spill]] %s2435_s1 }
   0x3   :  { %2462 = sst [smem:[#allocation18_spill]] %s2436_s2 }
   0x4   :  { %2463 = sst [smem:[#allocation19_spill]] %s2437_s3 }
   0x5   :  { %2464 = sst [smem:[#allocation20_spill]] %s2438_s4 }
   0x6   :  { %2465 = sst [smem:[#allocation21_spill]] %s2439_s5 }
   0x7   :  { %2466 = sst [smem:[#allocation22_spill]] %s2440_s6 }
   0x8   :  { %2467 = sst [smem:[#allocation23_spill]] %s2441_s7 }
   0x9   :  { %28 = vsyncpa [#allocation3], 0 }
   0xa   :  { %29 = vsyncpa [#allocation5], 0 }
   0xb   :  { %30 = vsyncpa [#allocation8], 0 }
   0xc   :  { %31 = vsyncpa [#allocation11], 0  ;;  %s1869_s4 = smov [#allocation4]   ;;  %s1870_s24 = smov [#allocation7]  }
   0xd   :  { %s65_s30 = sshll.u32 %s1869_s4, 4  ;;  %s93_s25 = sshll.u32 %s1870_s24, 4  ;;  %s66_s30 = int_to_ptr.vmem [resolvable:$true] %s65_s30  ;;  %s94_s25 = int_to_ptr.vmem [resolvable:$true] %s93_s25 }
   0xe   :  { %s1749_s5 = scalar_lea.vmem %s66_s30, 2048  ;;  %p1754_p1 = scmp.lt.s32.totalorder %s66_s30, %s66_s30 }
   0xf   :  { %p1750_p0 = scmp.ne.s32.totalorder %s66_s30, %s1749_s5  ;;  %p1755_p2 = scmp.lt.s32.totalorder %s1749_s5, %s1749_s5 }
  0x11   :  { %p1756_p3 = por %p1755_p2, %p1754_p1 }
  0x13   :  { %p1757_p4 = pnand %p1756_p3, %p1750_p0 }
  0x15   :  { %1760 = shalt.err (!%p1757_p4)
}
  0x16   :  { %s1871_s1 = smov 128   ;;  %s1872_s26 = smov 8  }
  0x17   :  { %71 = dma.hbm_to_vmem [thread:$0]  %s2443_s9, 2048, %s66_s30, [#allocation5], %s1871_s1, %s1871_s1, %s1872_s26  }
  0x18   :  { %s1769_s27 = scalar_lea.vmem %s94_s25, 2048  ;;  %p1774_p6 = scmp.lt.s32.totalorder %s94_s25, %s94_s25 }
  0x19   :  { %p1770_p5 = scmp.ne.s32.totalorder %s94_s25, %s1769_s27  ;;  %p1775_p7 = scmp.lt.s32.totalorder %s1769_s27, %s1769_s27 }
  0x1b   :  { %p1776_p8 = por %p1775_p7, %p1774_p6 }
  0x1d   :  { %p1777_p9 = pnand %p1776_p8, %p1770_p5 }
  0x1f   :  { %1780 = shalt.err (!%p1777_p9)
}
  0x20   :  { %99 = dma.hbm_to_vmem [thread:$0]  %s2447_s13, 2048, %s94_s25, [#allocation8], %s1871_s1, %s1871_s1, %s1872_s26  }
  0x21   :  { %s1873_s29 = smov [#allocation2]   ;;  %s1874_s0 = smov [#allocation6]  }
  0x22   :  { %s51_s3 = sshll.u32 %s1873_s29, 4  ;;  %s79_s4 = sshll.u32 %s1874_s0, 4  ;;  %s52_s3 = int_to_ptr.vmem [resolvable:$true] %s51_s3  ;;  %s80_s4 = int_to_ptr.vmem [resolvable:$true] %s79_s4 }
  0x23   :  { %s1789_s9 = scalar_lea.vmem %s52_s3, 2048  ;;  %p1794_p11 = scmp.lt.s32.totalorder %s52_s3, %s52_s3 }
  0x24   :  { %p1790_p10 = scmp.ne.s32.totalorder %s52_s3, %s1789_s9  ;;  %p1795_p12 = scmp.lt.s32.totalorder %s1789_s9, %s1789_s9 }
  0x26   :  { %p1796_p13 = por %p1795_p12, %p1794_p11 }
  0x28   :  { %p1797_p0 = pnand %p1796_p13, %p1790_p10 }
  0x2a   :  { %1800 = shalt.err (!%p1797_p0)
}
  0x2b   :  { %s2468_s5 = sld [smem:[#allocation23_spill]]  ;;  %s1809_s13 = scalar_lea.vmem %s80_s4, 2048 }
  0x2c   :  { %p1810_p1 = scmp.ne.s32.totalorder %s80_s4, %s1809_s13  ;;  %p1814_p2 = scmp.lt.s32.totalorder %s80_s4, %s80_s4 }
  0x2d   :  { %p1815_p3 = scmp.lt.s32.totalorder %s1809_s13, %s1809_s13 }
  0x2f   :  { %p1816_p4 = por %p1815_p3, %p1814_p2 }
  0x31   :  { %57 = dma.hbm_to_vmem [thread:$0]  %s2468_s5, 2048, %s52_s3, [#allocation3], %s1871_s1, %s1871_s1, %s1872_s26  }
  0x32   :  { %p1817_p5 = pnand %p1816_p4, %p1810_p1 }
  0x34   :  { %1820 = shalt.err (!%p1817_p5)
}
  0x35   :  { %85 = dma.hbm_to_vmem [thread:$0]  %s2445_s11, 2048, %s80_s4, [#allocation5], %s1871_s1, %s1871_s1, %s1872_s26  }
  0x36   :  { %s1875_s6 = smov [#allocation9]   ;;  %s1876_s7 = smov [#allocation10]  }
  0x37   :  { %s107_s27 = sshll.u32 %s1875_s6, 4  ;;  %s121_s28 = sshll.u32 %s1876_s7, 4  ;;  %s108_s27 = int_to_ptr.vmem [resolvable:$true] %s107_s27  ;;  %s122_s28 = int_to_ptr.vmem [resolvable:$true] %s121_s28 }
  0x38   :  { %s1829_s29 = scalar_lea.vmem %s108_s27, 2048  ;;  %p1834_p7 = scmp.lt.s32.totalorder %s108_s27, %s108_s27 }
  0x39   :  { %p1830_p6 = scmp.ne.s32.totalorder %s108_s27, %s1829_s29  ;;  %p1835_p8 = scmp.lt.s32.totalorder %s1829_s29, %s1829_s29 }
  0x3b   :  { %p1836_p9 = por %p1835_p8, %p1834_p7 }
  0x3d   :  { %p1837_p10 = pnand %p1836_p9, %p1830_p6 }
  0x3f   :  { %1840 = shalt.err (!%p1837_p10)
}
  0x40   :  { %113 = dma.hbm_to_vmem [thread:$0]  %s2449_s15, 2048, %s108_s27, [#allocation8], %s1871_s1, %s1871_s1, %s1872_s26  }
  0x41   :  { %s1849_s11 = scalar_lea.vmem %s122_s28, 2048  ;;  %p1854_p12 = scmp.lt.s32.totalorder %s122_s28, %s122_s28 }
  0x42   :  { %p1850_p11 = scmp.ne.s32.totalorder %s122_s28, %s1849_s11  ;;  %p1855_p13 = scmp.lt.s32.totalorder %s1849_s11, %s1849_s11 }
  0x44   :  { %p1856_p0 = por %p1855_p13, %p1854_p12 }
  0x46   :  { %p1857_p1 = pnand %p1856_p0, %p1850_p11 }
  0x48   :  { %1860 = shalt.err (!%p1857_p1)
}
  0x49   :  { %127 = dma.hbm_to_vmem [thread:$0]  %s2451_s17, 2048, %s122_s28, [#allocation11], %s1871_s1, %s1871_s1, %s1872_s26  }
  0x4a   :  { %1861 = dma.done.wait [#allocation3], 2048  }
  0x4b   :  { %1862 = vsyncadd [#allocation3], 4294965248 }
  0x4c   :  { %1863 = dma.done.wait [#allocation5], 4096  }
  0x4d   :  { %1864 = vsyncadd [#allocation5], 4294963200 }
  0x4e   :  { %1865 = dma.done.wait [#allocation8], 4096  }
  0x4f   :  { %1866 = vsyncadd [#allocation8], 4294963200 }
  0x50   :  { %1867 = dma.done.wait [#allocation11], 2048  }
  0x51   :  { %1868 = vsyncadd [#allocation11], 4294965248  ;;  %v1877_v0 = vmov 0.0   ;;  %vm1878_vm0 = vmmov 0   ;;  %vm169_vm1 = vcmask 1041408   ;;  %vm165_vm2 = vcmask 15360  }
  0x52   :  { %1370 = vmatprep.subr.mxu0 %v1877_v0  ;;  %1372 = vmatprep.mubr.msk.f32.mxu0 %vm1878_vm0, %v1877_v0  ;;  %s2469_s1 = sld [smem:[#allocation17_spill]]  ;;  %v447_v40 = vld [vmem:[#allocation2 + $0x78] sm:$0xff]  ;;  %v446_v41 = vld [vmem:[#allocation2 + $0x70] sm:$0xff]  ;;  %v445_v42 = vld [vmem:[#allocation2 + $0x68] sm:$0xff]  ;;  %vm1109_vm3 = vcmask 523264  }
  0x53   :  { %1375 = vmatprep.subr.mxu1 %v1877_v0  ;;  %1407 = vmatprep.mubr.msk.f32.mxu1 %vm1878_vm0, %v1877_v0  ;;  %s2470_s24 = sld [smem:[#allocation16_spill]]  ;;  %v444_v43 = vld [vmem:[#allocation2 + $0x60] sm:$0xff]  ;;  %v443_v44 = vld [vmem:[#allocation2 + $0x58] sm:$0xff]  ;;  %v442_v45 = vld [vmem:[#allocation2 + $0x50] sm:$0xff] }
  0x54   :  { %s2471_s25 = sld [smem:[#allocation19_spill]]  ;;  %v441_v46 = vld [vmem:[#allocation2 + $0x48] sm:$0xff]  ;;  %v440_v52 = vld [vmem:[#allocation2 + $0x40] sm:$0xff]  ;;  %v439_v53 = vld [vmem:[#allocation2 + $0x38] sm:$0xff] }
  0x55   :  { %s2473_s11 = sld [smem:[#allocation18_spill]]  ;;  %v438_v54 = vld [vmem:[#allocation2 + $0x30] sm:$0xff]  ;;  %v437_v55 = vld [vmem:[#allocation2 + $0x28] sm:$0xff]  ;;  %v436_v56 = vld [vmem:[#allocation2 + $0x20] sm:$0xff] }
  0x56   :  { %s2474_s4 = sld [smem:[#allocation20_spill]]  ;;  %v435_v57 = vld [vmem:[#allocation2 + $0x18] sm:$0xff]  ;;  %v434_v58 = vld [vmem:[#allocation2 + $0x10] sm:$0xff]  ;;  %v433_v59 = vld [vmem:[#allocation2 + $0x8] sm:$0xff] }
  0x57   :  { %v432_v60 = vld [vmem:[#allocation2] sm:$0xff]  ;;  %v542_v61 = vld [vmem:[#allocation4 + $0x78] sm:$0xff]  ;;  %v541_v62 = vld [vmem:[#allocation4 + $0x70] sm:$0xff]  ;;  %s2475_s17 = sld [smem:[#allocation22_spill]] }
  0x58   :  { %v157_v1 = vld [vmem:[%s2469_s1] sm:$0x3]  ;;  %s2472_s1 = sld [smem:[#allocation21_spill]]  ;;  %v540_v63 = vld [vmem:[#allocation4 + $0x68] sm:$0xff] }
  0x59   :  { %v156_v2 = vld [vmem:[%s2470_s24] sm:$0xff]  ;;  %1371 = vmatpush3.msk.msra.mxu0 %vm169_vm1, %v157_v1 }
  0x5a   :  { %v259_v3 = vld [vmem:[%s2471_s25 + $0x78] sm:$0xff]  ;;  %v258_v4 = vld [vmem:[%s2471_s25 + $0x70] sm:$0xff]  ;;  %1373 = vmatmul.mubr.msk.f32.vlgmr.msra.gmra.mxu0 %vm165_vm2, %v156_v2  ;;  %v257_v5 = vld [vmem:[%s2471_s25 + $0x68] sm:$0xff]  ;;  %1410 = vmatprep.subr.mxu0 %v1877_v0 }
  0x5b   :  { %1376 = vmatpush3.msra.mxu1 %v259_v3  ;;  %v256_v6 = vld [vmem:[%s2471_s25 + $0x60] sm:$0xff]  ;;  %1442 = vmatprep.mubr.msk.f32.mxu0 %vm1878_vm0, %v1877_v0  ;;  %v255_v7 = vld [vmem:[%s2471_s25 + $0x58] sm:$0xff]  ;;  %v254_v8 = vld [vmem:[%s2471_s25 + $0x50] sm:$0xff] }
  0x5c   :  { %1377 = vmatprep.subr.mxu1 %v1877_v0  ;;  %v253_v9 = vld [vmem:[%s2471_s25 + $0x48] sm:$0xff]  ;;  %v252_v10 = vld [vmem:[%s2471_s25 + $0x40] sm:$0xff]  ;;  %v251_v11 = vld [vmem:[%s2471_s25 + $0x38] sm:$0xff] }
  0x5d   :  { %1378 = vmatpush3.msra.mxu1 %v258_v4  ;;  %v250_v12 = vld [vmem:[%s2471_s25 + $0x30] sm:$0xff]  ;;  %v249_v13 = vld [vmem:[%s2471_s25 + $0x28] sm:$0xff]  ;;  %v248_v14 = vld [vmem:[%s2471_s25 + $0x20] sm:$0xff] }
  0x5e   :  { %1379 = vmatprep.subr.mxu1 %v1877_v0  ;;  %v247_v15 = vld [vmem:[%s2471_s25 + $0x18] sm:$0xff]  ;;  %v246_v16 = vld [vmem:[%s2471_s25 + $0x10] sm:$0xff]  ;;  %v245_v17 = vld [vmem:[%s2471_s25 + $0x8] sm:$0xff] }
  0x5f   :  { %1380 = vmatpush3.msra.mxu1 %v257_v5  ;;  %v244_v18 = vld [vmem:[%s2471_s25] sm:$0xff]  ;;  %v353_v19 = vld [vmem:[%s2472_s1 + $0x78] sm:$0xff]  ;;  %v352_v20 = vld [vmem:[%s2472_s1 + $0x70] sm:$0xff] }
  0x60   :  { %1381 = vmatprep.subr.mxu1 %v1877_v0  ;;  %1411 = vmatpush3.msra.mxu0 %v353_v19  ;;  %v351_v21 = vld [vmem:[%s2472_s1 + $0x68] sm:$0xff]  ;;  %v350_v22 = vld [vmem:[%s2472_s1 + $0x60] sm:$0xff]  ;;  %v349_v23 = vld [vmem:[%s2472_s1 + $0x58] sm:$0xff] }
  0x61   :  { %1382 = vmatpush3.msra.mxu1 %v256_v6  ;;  %1412 = vmatprep.subr.mxu0 %v1877_v0  ;;  %v348_v24 = vld [vmem:[%s2472_s1 + $0x50] sm:$0xff]  ;;  %v347_v25 = vld [vmem:[%s2472_s1 + $0x48] sm:$0xff]  ;;  %v1192_v26 = vld [vmem:[%s2473_s11] ss:$0 sm:$0xff] }
  0x62   :  { %1383 = vmatprep.subr.mxu1 %v1877_v0  ;;  %1413 = vmatpush3.msra.mxu0 %v352_v20  ;;  %v346_v31 = vld [vmem:[%s2472_s1 + $0x40] sm:$0xff]  ;;  %v345_v32 = vld [vmem:[%s2472_s1 + $0x38] sm:$0xff]  ;;  %v344_v33 = vld [vmem:[%s2472_s1 + $0x30] sm:$0xff] }
  0x63   :  { %1384 = vmatpush3.msra.mxu1 %v255_v7  ;;  %1414 = vmatprep.subr.mxu0 %v1877_v0  ;;  %v343_v34 = vld [vmem:[%s2472_s1 + $0x28] sm:$0xff]  ;;  %v342_v35 = vld [vmem:[%s2472_s1 + $0x20] sm:$0xff]  ;;  %v341_v36 = vld [vmem:[%s2472_s1 + $0x18] sm:$0xff] }
  0x64   :  { %1385 = vmatprep.subr.mxu1 %v1877_v0  ;;  %1415 = vmatpush3.msra.mxu0 %v351_v21  ;;  %v340_v37 = vld [vmem:[%s2472_s1 + $0x10] sm:$0xff]  ;;  %v339_v38 = vld [vmem:[%s2472_s1 + $0x8] sm:$0xff]  ;;  %v338_v39 = vld [vmem:[%s2472_s1] sm:$0xff] }
  0x65   :  { %1386 = vmatpush3.msra.mxu1 %v254_v8  ;;  %1416 = vmatprep.subr.mxu0 %v1877_v0  ;;  %v1195_v47 = vld [vmem:[%s2474_s4] ss:$0 sm:$0xff]  ;;  %v538_v2 = vld [vmem:[#allocation4 + $0x58] sm:$0xff]  ;;  %v537_v3 = vld [vmem:[#allocation4 + $0x50] sm:$0xff] }
  0x66   :  { %1387 = vmatprep.subr.mxu1 %v1877_v0  ;;  %1417 = vmatpush3.msra.mxu0 %v350_v22  ;;  %v539_v1 = vld [vmem:[#allocation4 + $0x60] sm:$0xff]  ;;  %v636_v19 = vld [vmem:[#allocation6 + $0x78] sm:$0xff]  ;;  %v635_v20 = vld [vmem:[#allocation6 + $0x70] sm:$0xff] }
  0x67   :  { %1388 = vmatpush3.msra.mxu1 %v253_v9  ;;  %1418 = vmatprep.subr.mxu0 %v1877_v0  ;;  %v1196_v4 = vld [vmem:[%s2475_s17] ss:$0 sm:$0xff]  ;;  %v536_v9 = vld [vmem:[#allocation4 + $0x48] sm:$0xff] }
  0x68   :  { %1389 = vmatprep.subr.mxu1 %v1877_v0  ;;  %1419 = vmatpush3.msra.mxu0 %v349_v23  ;;  %v634_v21 = vld [vmem:[#allocation6 + $0x68] sm:$0xff]  ;;  %v633_v22 = vld [vmem:[#allocation6 + $0x60] sm:$0xff]  ;;  %v632_v23 = vld [vmem:[#allocation6 + $0x58] sm:$0xff] }
  0x69   :  { %1390 = vmatpush3.msra.mxu1 %v252_v10  ;;  %1420 = vmatprep.subr.mxu0 %v1877_v0  ;;  %v535_v10 = vld [vmem:[#allocation4 + $0x40] sm:$0xff] }
  0x6a   :  { %1391 = vmatprep.subr.mxu1 %v1877_v0  ;;  %1421 = vmatpush3.msra.mxu0 %v348_v24  ;;  %v631_v24 = vld [vmem:[#allocation6 + $0x50] sm:$0xff] }
  0x6b   :  { %1392 = vmatpush3.msra.mxu1 %v251_v11  ;;  %1422 = vmatprep.subr.mxu0 %v1877_v0  ;;  %v534_v11 = vld [vmem:[#allocation4 + $0x38] sm:$0xff] }
  0x6c   :  { %1393 = vmatprep.subr.mxu1 %v1877_v0  ;;  %1423 = vmatpush3.msra.mxu0 %v347_v25  ;;  %v630_v25 = vld [vmem:[#allocation6 + $0x48] sm:$0xff] }
  0x6d   :  { %1394 = vmatpush3.msra.mxu1 %v250_v12  ;;  %1424 = vmatprep.subr.mxu0 %v1877_v0  ;;  %v533_v12 = vld [vmem:[#allocation4 + $0x30] sm:$0xff] }
  0x6e   :  { %1395 = vmatprep.subr.mxu1 %v1877_v0  ;;  %1425 = vmatpush3.msra.mxu0 %v346_v31 }
  0x6f   :  { %1396 = vmatpush3.msra.mxu1 %v249_v13  ;;  %1426 = vmatprep.subr.mxu0 %v1877_v0  ;;  %v532_v13 = vld [vmem:[#allocation4 + $0x28] sm:$0xff] }
  0x70   :  { %1397 = vmatprep.subr.mxu1 %v1877_v0  ;;  %1427 = vmatpush3.msra.mxu0 %v345_v32 }
  0x71   :  { %1398 = vmatpush3.msra.mxu1 %v248_v14  ;;  %1428 = vmatprep.subr.mxu0 %v1877_v0  ;;  %v531_v14 = vld [vmem:[#allocation4 + $0x20] sm:$0xff] }
  0x72   :  { %1399 = vmatprep.subr.mxu1 %v1877_v0  ;;  %1429 = vmatpush3.msra.mxu0 %v344_v33  ;;  %v629_v33 = vld [vmem:[#allocation6 + $0x40] sm:$0xff] }
  0x73   :  { %1400 = vmatpush3.msra.mxu1 %v247_v15  ;;  %1430 = vmatprep.subr.mxu0 %v1877_v0  ;;  %v530_v15 = vld [vmem:[#allocation4 + $0x18] sm:$0xff] }
  0x74   :  { %1401 = vmatprep.subr.mxu1 %v1877_v0  ;;  %1431 = vmatpush3.msra.mxu0 %v343_v34  ;;  %v628_v34 = vld [vmem:[#allocation6 + $0x38] sm:$0xff] }
  0x75   :  { %1402 = vmatpush3.msra.mxu1 %v246_v16  ;;  %1432 = vmatprep.subr.mxu0 %v1877_v0  ;;  %v529_v16 = vld [vmem:[#allocation4 + $0x10] sm:$0xff] }
  0x76   :  { %1403 = vmatprep.subr.mxu1 %v1877_v0  ;;  %1433 = vmatpush3.msra.mxu0 %v342_v35  ;;  %v627_v35 = vld [vmem:[#allocation6 + $0x30] sm:$0xff] }
  0x77   :  { %1404 = vmatpush3.msra.mxu1 %v245_v17  ;;  %1434 = vmatprep.subr.mxu0 %v1877_v0  ;;  %v528_v17 = vld [vmem:[#allocation4 + $0x8] sm:$0xff] }
  0x78   :  { %1405 = vmatprep.subr.mxu1 %v1877_v0  ;;  %1435 = vmatpush3.msra.mxu0 %v341_v36  ;;  %v626_v36 = vld [vmem:[#allocation6 + $0x28] sm:$0xff] }
  0x79   :  { %1406 = vmatpush3.msra.mxu1 %v244_v18  ;;  %1436 = vmatprep.subr.mxu0 %v1877_v0  ;;  %v527_v18 = vld [vmem:[#allocation4] sm:$0xff] }
  0x7a   :  { %1445 = vmatprep.subr.mxu1 %v1877_v0  ;;  %1437 = vmatpush3.msra.mxu0 %v340_v37  ;;  %v624_v37 = vld [vmem:[#allocation6 + $0x18] sm:$0xff] }
  0x7b   :  { %1438 = vmatprep.subr.mxu0 %v1877_v0 }
  0x7c   :  { %1439 = vmatpush3.msra.mxu0 %v339_v38  ;;  %v623_v38 = vld [vmem:[#allocation6 + $0x10] sm:$0xff] }
  0x7d   :  { %1440 = vmatprep.subr.mxu0 %v1877_v0 }
  0x7e   :  { %1441 = vmatpush3.msra.mxu0 %v338_v39  ;;  %v622_v39 = vld [vmem:[#allocation6 + $0x8] sm:$0xff] }
  0x7f   :  { %1480 = vmatprep.subr.mxu0 %v1877_v0 }
 0x11a   :  { %v239_v27 = vpop.f32.mrf.mxu0 }
 0x11b   :  { %v240_v28 = vadd.f32 %v1192_v26, %v239_v27  ;;  %v1197_v26 = vld [vmem:[%s2442_s8] ss:$0 sm:$0xff] }
 0x11c   :  { %v1374_v29 = vpop.f32.mrf.mxu0 }
 0x11d   :  { %1719 = vtanh.f32 %v240_v28 }
 0x12a   :  { %v2146_v30 = vpop.eup %1719 }
 0x12b   :  { %1408 = vmatmul.mubr.f32.vlgmr.msra.gmra.mxu1 %v2146_v30 }
 0x12c   :  { %1477 = vmatprep.mubr.msk.f32.mxu1 %vm1878_vm0, %v1877_v0  ;;  %1446 = vmatpush3.msra.mxu1 %v447_v40  ;;  %v621_v40 = vld [vmem:[#allocation6] sm:$0xff] }
 0x12d   :  { %1447 = vmatprep.subr.mxu1 %v1877_v0 }
 0x12e   :  { %1448 = vmatpush3.msra.mxu1 %v446_v41  ;;  %v730_v41 = vld [vmem:[#allocation7 + $0x78] sm:$0xff] }
 0x12f   :  { %1449 = vmatprep.subr.mxu1 %v1877_v0 }
 0x130   :  { %1450 = vmatpush3.msra.mxu1 %v445_v42  ;;  %v729_v42 = vld [vmem:[#allocation7 + $0x70] sm:$0xff] }
 0x131   :  { %1451 = vmatprep.subr.mxu1 %v1877_v0 }
 0x132   :  { %1452 = vmatpush3.msra.mxu1 %v444_v43  ;;  %v728_v43 = vld [vmem:[#allocation7 + $0x68] sm:$0xff] }
 0x133   :  { %1453 = vmatprep.subr.mxu1 %v1877_v0 }
 0x134   :  { %1454 = vmatpush3.msra.mxu1 %v443_v44  ;;  %v727_v44 = vld [vmem:[#allocation7 + $0x60] sm:$0xff] }
 0x135   :  { %1455 = vmatprep.subr.mxu1 %v1877_v0 }
 0x136   :  { %1456 = vmatpush3.msra.mxu1 %v442_v45  ;;  %v726_v45 = vld [vmem:[#allocation7 + $0x58] sm:$0xff] }
 0x137   :  { %1457 = vmatprep.subr.mxu1 %v1877_v0 }
 0x138   :  { %1458 = vmatpush3.msra.mxu1 %v441_v46  ;;  %v725_v46 = vld [vmem:[#allocation7 + $0x50] sm:$0xff] }
 0x139   :  { %1459 = vmatprep.subr.mxu1 %v1877_v0 }
 0x13a   :  { %1460 = vmatpush3.msra.mxu1 %v440_v52 }
 0x13b   :  { %1461 = vmatprep.subr.mxu1 %v1877_v0 }
 0x13c   :  { %1462 = vmatpush3.msra.mxu1 %v439_v53  ;;  %v723_v53 = vld [vmem:[#allocation7 + $0x40] sm:$0xff] }
 0x13d   :  { %1463 = vmatprep.subr.mxu1 %v1877_v0 }
 0x13e   :  { %1464 = vmatpush3.msra.mxu1 %v438_v54  ;;  %v722_v54 = vld [vmem:[#allocation7 + $0x38] sm:$0xff] }
 0x13f   :  { %1465 = vmatprep.subr.mxu1 %v1877_v0 }
 0x140   :  { %1466 = vmatpush3.msra.mxu1 %v437_v55  ;;  %v721_v55 = vld [vmem:[#allocation7 + $0x30] sm:$0xff] }
 0x141   :  { %1467 = vmatprep.subr.mxu1 %v1877_v0 }
 0x142   :  { %1468 = vmatpush3.msra.mxu1 %v436_v56  ;;  %v720_v56 = vld [vmem:[#allocation7 + $0x28] sm:$0xff] }
 0x143   :  { %1469 = vmatprep.subr.mxu1 %v1877_v0 }
 0x144   :  { %1470 = vmatpush3.msra.mxu1 %v435_v57  ;;  %v719_v57 = vld [vmem:[#allocation7 + $0x20] sm:$0xff] }
 0x145   :  { %1471 = vmatprep.subr.mxu1 %v1877_v0 }
 0x146   :  { %1472 = vmatpush3.msra.mxu1 %v434_v58  ;;  %v718_v58 = vld [vmem:[#allocation7 + $0x18] sm:$0xff] }
 0x147   :  { %1473 = vmatprep.subr.mxu1 %v1877_v0 }
 0x148   :  { %1474 = vmatpush3.msra.mxu1 %v433_v59  ;;  %v717_v59 = vld [vmem:[#allocation7 + $0x10] sm:$0xff] }
 0x149   :  { %1475 = vmatprep.subr.mxu1 %v1877_v0 }
 0x14a   :  { %1476 = vmatpush3.msra.mxu1 %v432_v60  ;;  %v716_v60 = vld [vmem:[#allocation7 + $0x8] sm:$0xff] }
 0x14b   :  { %1515 = vmatprep.subr.mxu1 %v1877_v0 }
 0x1eb   :  { %v333_v48 = vpop.f32.mrf.mxu1 }
 0x1ec   :  { %v334_v49 = vadd.f32 %v1195_v47, %v333_v48  ;;  %v724_v47 = vld [vmem:[#allocation7 + $0x48] sm:$0xff]  ;;  %v1198_v48 = vld [vmem:[%s2444_s10] ss:$0 sm:$0xff] }
 0x1ed   :  { %v1409_v50 = vpop.f32.mrf.mxu1 }
 0x1ee   :  { %1721 = vtanh.f32 %v334_v49 }
 0x1fb   :  { %v1722_v51 = vpop.eup %1721 }
 0x1fc   :  { %1443 = vmatmul.mubr.f32.vlgmr.msra.gmra.mxu0 %v1722_v51 }
 0x1fd   :  { %1512 = vmatprep.mubr.msk.f32.mxu0 %vm1878_vm0, %v1877_v0  ;;  %1481 = vmatpush3.msra.mxu0 %v542_v61  ;;  %v715_v61 = vld [vmem:[#allocation7] sm:$0xff] }
 0x1fe   :  { %1482 = vmatprep.subr.mxu0 %v1877_v0 }
 0x1ff   :  { %1483 = vmatpush3.msra.mxu0 %v541_v62  ;;  %v825_v62 = vld [vmem:[#allocation9 + $0x78] sm:$0xff] }
 0x200   :  { %1484 = vmatprep.subr.mxu0 %v1877_v0 }
 0x201   :  { %1485 = vmatpush3.msra.mxu0 %v540_v63  ;;  %v824_v63 = vld [vmem:[#allocation9 + $0x70] sm:$0xff] }
 0x202   :  { %1486 = vmatprep.subr.mxu0 %v1877_v0 }
 0x203   :  { %1487 = vmatpush3.msra.mxu0 %v539_v1  ;;  %v823_v1 = vld [vmem:[#allocation9 + $0x68] sm:$0xff] }
 0x204   :  { %1488 = vmatprep.subr.mxu0 %v1877_v0 }
 0x205   :  { %1489 = vmatpush3.msra.mxu0 %v538_v2  ;;  %v822_v2 = vld [vmem:[#allocation9 + $0x60] sm:$0xff] }
 0x206   :  { %1490 = vmatprep.subr.mxu0 %v1877_v0 }
 0x207   :  { %1491 = vmatpush3.msra.mxu0 %v537_v3  ;;  %v821_v3 = vld [vmem:[#allocation9 + $0x58] sm:$0xff] }
 0x208   :  { %1492 = vmatprep.subr.mxu0 %v1877_v0 }
 0x209   :  { %1493 = vmatpush3.msra.mxu0 %v536_v9 }
 0x20a   :  { %1494 = vmatprep.subr.mxu0 %v1877_v0 }
 0x20b   :  { %1495 = vmatpush3.msra.mxu0 %v535_v10  ;;  %v819_v10 = vld [vmem:[#allocation9 + $0x48] sm:$0xff] }
 0x20c   :  { %1496 = vmatprep.subr.mxu0 %v1877_v0 }
 0x20d   :  { %1497 = vmatpush3.msra.mxu0 %v534_v11  ;;  %v818_v11 = vld [vmem:[#allocation9 + $0x40] sm:$0xff] }
 0x20e   :  { %1498 = vmatprep.subr.mxu0 %v1877_v0 }
 0x20f   :  { %1499 = vmatpush3.msra.mxu0 %v533_v12  ;;  %v817_v12 = vld [vmem:[#allocation9 + $0x38] sm:$0xff] }
 0x210   :  { %1500 = vmatprep.subr.mxu0 %v1877_v0 }
 0x211   :  { %1501 = vmatpush3.msra.mxu0 %v532_v13  ;;  %v816_v13 = vld [vmem:[#allocation9 + $0x30] sm:$0xff] }
 0x212   :  { %1502 = vmatprep.subr.mxu0 %v1877_v0 }
 0x213   :  { %1503 = vmatpush3.msra.mxu0 %v531_v14  ;;  %v815_v14 = vld [vmem:[#allocation9 + $0x28] sm:$0xff] }
 0x214   :  { %1504 = vmatprep.subr.mxu0 %v1877_v0 }
 0x215   :  { %1505 = vmatpush3.msra.mxu0 %v530_v15  ;;  %v814_v15 = vld [vmem:[#allocation9 + $0x20] sm:$0xff] }
 0x216   :  { %1506 = vmatprep.subr.mxu0 %v1877_v0 }
 0x217   :  { %1507 = vmatpush3.msra.mxu0 %v529_v16  ;;  %v813_v16 = vld [vmem:[#allocation9 + $0x18] sm:$0xff] }
 0x218   :  { %1508 = vmatprep.subr.mxu0 %v1877_v0 }
 0x219   :  { %1509 = vmatpush3.msra.mxu0 %v528_v17  ;;  %v812_v17 = vld [vmem:[#allocation9 + $0x10] sm:$0xff] }
 0x21a   :  { %1510 = vmatprep.subr.mxu0 %v1877_v0 }
 0x21b   :  { %1511 = vmatpush3.msra.mxu0 %v527_v18  ;;  %v811_v18 = vld [vmem:[#allocation9 + $0x8] sm:$0xff] }
 0x21c   :  { %1550 = vmatprep.subr.mxu0 %v1877_v0 }
 0x2bc   :  { %v427_v5 = vpop.f32.mrf.mxu0 }
 0x2bd   :  { %v428_v6 = vadd.f32 %v1196_v4, %v427_v5  ;;  %v820_v4 = vld [vmem:[#allocation9 + $0x50] sm:$0xff]  ;;  %v1199_v5 = vld [vmem:[%s2446_s12] ss:$0 sm:$0xff] }
 0x2be   :  { %v1444_v7 = vpop.f32.mrf.mxu0 }
 0x2bf   :  { %1723 = vtanh.f32 %v428_v6 }
 0x2cc   :  { %v1724_v8 = vpop.eup %1723 }
 0x2cd   :  { %1478 = vmatmul.mubr.f32.vlgmr.msra.gmra.mxu1 %v1724_v8 }
 0x2ce   :  { %1547 = vmatprep.mubr.msk.f32.mxu1 %vm1878_vm0, %v1877_v0  ;;  %1516 = vmatpush3.msra.mxu1 %v636_v19  ;;  %v810_v19 = vld [vmem:[#allocation9] sm:$0xff] }
 0x2cf   :  { %1517 = vmatprep.subr.mxu1 %v1877_v0 }
 0x2d0   :  { %1518 = vmatpush3.msra.mxu1 %v635_v20  ;;  %v919_v20 = vld [vmem:[#allocation10 + $0x78] sm:$0xff] }
 0x2d1   :  { %1519 = vmatprep.subr.mxu1 %v1877_v0 }
 0x2d2   :  { %1520 = vmatpush3.msra.mxu1 %v634_v21  ;;  %v918_v21 = vld [vmem:[#allocation10 + $0x70] sm:$0xff] }
 0x2d3   :  { %1521 = vmatprep.subr.mxu1 %v1877_v0 }
 0x2d4   :  { %1522 = vmatpush3.msra.mxu1 %v633_v22  ;;  %v917_v22 = vld [vmem:[#allocation10 + $0x68] sm:$0xff] }
 0x2d5   :  { %1523 = vmatprep.subr.mxu1 %v1877_v0 }
 0x2d6   :  { %1524 = vmatpush3.msra.mxu1 %v632_v23  ;;  %v916_v23 = vld [vmem:[#allocation10 + $0x60] sm:$0xff] }
 0x2d7   :  { %1525 = vmatprep.subr.mxu1 %v1877_v0 }
 0x2d8   :  { %1526 = vmatpush3.msra.mxu1 %v631_v24  ;;  %v915_v24 = vld [vmem:[#allocation10 + $0x58] sm:$0xff] }
 0x2d9   :  { %1527 = vmatprep.subr.mxu1 %v1877_v0 }
 0x2da   :  { %1528 = vmatpush3.msra.mxu1 %v630_v25  ;;  %v914_v25 = vld [vmem:[#allocation10 + $0x50] sm:$0xff] }
 0x2db   :  { %1529 = vmatprep.subr.mxu1 %v1877_v0 }
 0x2dc   :  { %1530 = vmatpush3.msra.mxu1 %v629_v33 }
 0x2dd   :  { %1531 = vmatprep.subr.mxu1 %v1877_v0 }
 0x2de   :  { %1532 = vmatpush3.msra.mxu1 %v628_v34 }
 0x2df   :  { %1533 = vmatprep.subr.mxu1 %v1877_v0 }
 0x2e0   :  { %1534 = vmatpush3.msra.mxu1 %v627_v35  ;;  %v912_v35 = vld [vmem:[#allocation10 + $0x40] sm:$0xff] }
 0x2e1   :  { %1535 = vmatprep.subr.mxu1 %v1877_v0 }
 0x2e2   :  { %1536 = vmatpush3.msra.mxu1 %v626_v36  ;;  %v911_v36 = vld [vmem:[#allocation10 + $0x38] sm:$0xff] }
 0x2e3   :  { %1537 = vmatprep.subr.mxu1 %v1877_v0 }
 0x38d   :  { %v521_v27 = vpop.f32.mrf.mxu1 }
 0x38e   :  { %v522_v28 = vadd.f32 %v1197_v26, %v521_v27  ;;  %v913_v26 = vld [vmem:[#allocation10 + $0x48] sm:$0xff]  ;;  %v1200_v27 = vld [vmem:[%s2448_s14] ss:$0 sm:$0xff] }
 0x38f   :  { %v1479_v29 = vpop.f32.mrf.mxu1 }
 0x390   :  { %v525_v31 = vadd.f32 %v2146_v30, %v522_v28  ;;  %v625_v30 = vld [vmem:[#allocation6 + $0x20] sm:$0xff] }
 0x391   :  { %1538 = vmatpush3.msra.mxu1 %v625_v30  ;;  %v910_v30 = vld [vmem:[#allocation10 + $0x30] sm:$0xff] }
 0x392   :  { %1725 = vtanh.f32 %v525_v31  ;;  %1539 = vmatprep.subr.mxu1 %v1877_v0 }
 0x393   :  { %1540 = vmatpush3.msra.mxu1 %v624_v37  ;;  %v909_v37 = vld [vmem:[#allocation10 + $0x28] sm:$0xff] }
 0x394   :  { %1541 = vmatprep.subr.mxu1 %v1877_v0 }
 0x395   :  { %1542 = vmatpush3.msra.mxu1 %v623_v38  ;;  %v907_v38 = vld [vmem:[#allocation10 + $0x18] sm:$0xff] }
 0x396   :  { %1543 = vmatprep.subr.mxu1 %v1877_v0 }
 0x397   :  { %1544 = vmatpush3.msra.mxu1 %v622_v39  ;;  %v906_v39 = vld [vmem:[#allocation10 + $0x10] sm:$0xff] }
 0x398   :  { %1545 = vmatprep.subr.mxu1 %v1877_v0 }
 0x399   :  { %1546 = vmatpush3.msra.mxu1 %v621_v40  ;;  %v905_v40 = vld [vmem:[#allocation10 + $0x8] sm:$0xff] }
 0x39a   :  { %1585 = vmatprep.subr.mxu1 %v1877_v0 }
 0x39f   :  { %v2240_v32 = vpop.eup %1725 }
 0x3a0   :  { %1513 = vmatmul.mubr.f32.vlgmr.msra.gmra.mxu0 %v2240_v32 }
 0x3a1   :  { %1582 = vmatprep.mubr.msk.f32.mxu0 %vm1878_vm0, %v1877_v0  ;;  %1551 = vmatpush3.msra.mxu0 %v730_v41  ;;  %v904_v41 = vld [vmem:[#allocation10] sm:$0xff] }
 0x3a2   :  { %1552 = vmatprep.subr.mxu0 %v1877_v0 }
 0x3a3   :  { %1553 = vmatpush3.msra.mxu0 %v729_v42  ;;  %v1201_v42 = vld [vmem:[%s2450_s16] ss:$0 sm:$0xff] }
 0x3a4   :  { %1554 = vmatprep.subr.mxu0 %v1877_v0 }
 0x3a5   :  { %1555 = vmatpush3.msra.mxu0 %v728_v43 }
 0x3a6   :  { %1556 = vmatprep.subr.mxu0 %v1877_v0 }
 0x3a7   :  { %1557 = vmatpush3.msra.mxu0 %v727_v44 }
 0x3a8   :  { %1558 = vmatprep.subr.mxu0 %v1877_v0 }
 0x3a9   :  { %1559 = vmatpush3.msra.mxu0 %v726_v45 }
 0x3aa   :  { %1560 = vmatprep.subr.mxu0 %v1877_v0 }
 0x3ab   :  { %1561 = vmatpush3.msra.mxu0 %v725_v46 }
 0x3ac   :  { %1562 = vmatprep.subr.mxu0 %v1877_v0 }
 0x3ad   :  { %1563 = vmatpush3.msra.mxu0 %v724_v47  ;;  %v1015_v47 = vld [vmem:[%s2453_s19 + $0x78] sm:$0xff] }
 0x3ae   :  { %1564 = vmatprep.subr.mxu0 %v1877_v0 }
 0x3af   :  { %1565 = vmatpush3.msra.mxu0 %v723_v53  ;;  %v1009_v53 = vld [vmem:[%s2453_s19 + $0x48] sm:$0xff] }
 0x3b0   :  { %1566 = vmatprep.subr.mxu0 %v1877_v0 }
 0x3b1   :  { %1567 = vmatpush3.msra.mxu0 %v722_v54  ;;  %v1008_v54 = vld [vmem:[%s2453_s19 + $0x40] sm:$0xff] }
 0x3b2   :  { %1568 = vmatprep.subr.mxu0 %v1877_v0 }
 0x3b3   :  { %1569 = vmatpush3.msra.mxu0 %v721_v55  ;;  %v1007_v55 = vld [vmem:[%s2453_s19 + $0x38] sm:$0xff] }
 0x3b4   :  { %1570 = vmatprep.subr.mxu0 %v1877_v0 }
 0x3b5   :  { %1571 = vmatpush3.msra.mxu0 %v720_v56  ;;  %v1006_v56 = vld [vmem:[%s2453_s19 + $0x30] sm:$0xff] }
 0x3b6   :  { %1572 = vmatprep.subr.mxu0 %v1877_v0 }
 0x3b7   :  { %1573 = vmatpush3.msra.mxu0 %v719_v57  ;;  %v1005_v57 = vld [vmem:[%s2453_s19 + $0x28] sm:$0xff] }
 0x3b8   :  { %1574 = vmatprep.subr.mxu0 %v1877_v0 }
 0x3b9   :  { %1575 = vmatpush3.msra.mxu0 %v718_v58  ;;  %v1004_v58 = vld [vmem:[%s2453_s19 + $0x20] sm:$0xff] }
 0x3ba   :  { %1576 = vmatprep.subr.mxu0 %v1877_v0 }
 0x3bb   :  { %1577 = vmatpush3.msra.mxu0 %v717_v59  ;;  %v1003_v59 = vld [vmem:[%s2453_s19 + $0x18] sm:$0xff] }
 0x3bc   :  { %1578 = vmatprep.subr.mxu0 %v1877_v0 }
 0x3bd   :  { %1579 = vmatpush3.msra.mxu0 %v716_v60  ;;  %v1002_v60 = vld [vmem:[%s2453_s19 + $0x10] sm:$0xff] }
 0x3be   :  { %1580 = vmatprep.subr.mxu0 %v1877_v0 }
 0x3bf   :  { %1581 = vmatpush3.msra.mxu0 %v715_v61  ;;  %v1001_v61 = vld [vmem:[%s2453_s19 + $0x8] sm:$0xff] }
 0x3c0   :  { %1620 = vmatprep.subr.mxu0 %v1877_v0 }
 0x460   :  { %v616_v49 = vpop.f32.mrf.mxu0 }
 0x461   :  { %v617_v50 = vadd.f32 %v1198_v48, %v616_v49  ;;  %v1014_v48 = vld [vmem:[%s2453_s19 + $0x70] sm:$0xff]  ;;  %v1013_v49 = vld [vmem:[%s2453_s19 + $0x68] sm:$0xff] }
 0x462   :  { %v1514_v51 = vpop.f32.mrf.mxu0 }
 0x463   :  { %1727 = vtanh.f32 %v617_v50  ;;  %v1012_v50 = vld [vmem:[%s2453_s19 + $0x60] sm:$0xff]  ;;  %v1011_v51 = vld [vmem:[%s2453_s19 + $0x58] sm:$0xff] }
 0x470   :  { %v1728_v52 = vpop.eup %1727 }
 0x471   :  { %1548 = vmatmul.mubr.f32.vlgmr.msra.gmra.mxu1 %v1728_v52  ;;  %v1010_v52 = vld [vmem:[%s2453_s19 + $0x50] sm:$0xff] }
 0x472   :  { %1617 = vmatprep.mubr.msk.f32.mxu1 %vm1878_vm0, %v1877_v0  ;;  %1586 = vmatpush3.msra.mxu1 %v825_v62  ;;  %v1000_v62 = vld [vmem:[%s2453_s19] sm:$0xff] }
 0x473   :  { %1587 = vmatprep.subr.mxu1 %v1877_v0 }
 0x474   :  { %1588 = vmatpush3.msra.mxu1 %v824_v63  ;;  %v1202_v63 = vld [vmem:[%s2452_s18] ss:$0 sm:$0xff] }
 0x475   :  { %1589 = vmatprep.subr.mxu1 %v1877_v0 }
 0x476   :  { %1590 = vmatpush3.msra.mxu1 %v823_v1 }
 0x477   :  { %1591 = vmatprep.subr.mxu1 %v1877_v0 }
 0x478   :  { %1592 = vmatpush3.msra.mxu1 %v822_v2 }
 0x479   :  { %1593 = vmatprep.subr.mxu1 %v1877_v0 }
 0x47a   :  { %1594 = vmatpush3.msra.mxu1 %v821_v3 }
 0x47b   :  { %1595 = vmatprep.subr.mxu1 %v1877_v0 }
 0x47c   :  { %1596 = vmatpush3.msra.mxu1 %v820_v4 }
 0x47d   :  { %1597 = vmatprep.subr.mxu1 %v1877_v0 }
 0x47e   :  { %1598 = vmatpush3.msra.mxu1 %v819_v10  ;;  %v1098_v10 = vld [vmem:[%s2455_s21 + $0x20] sm:$0xff] }
 0x47f   :  { %1599 = vmatprep.subr.mxu1 %v1877_v0 }
 0x480   :  { %1600 = vmatpush3.msra.mxu1 %v818_v11  ;;  %v1097_v11 = vld [vmem:[%s2455_s21 + $0x18] sm:$0xff] }
 0x481   :  { %1601 = vmatprep.subr.mxu1 %v1877_v0 }
 0x482   :  { %1602 = vmatpush3.msra.mxu1 %v817_v12  ;;  %v1096_v12 = vld [vmem:[%s2455_s21 + $0x10] sm:$0xff] }
 0x483   :  { %1603 = vmatprep.subr.mxu1 %v1877_v0 }
 0x484   :  { %1604 = vmatpush3.msra.mxu1 %v816_v13  ;;  %v1095_v13 = vld [vmem:[%s2455_s21 + $0x8] sm:$0xff] }
 0x485   :  { %1605 = vmatprep.subr.mxu1 %v1877_v0 }
 0x486   :  { %1606 = vmatpush3.msra.mxu1 %v815_v14  ;;  %v1094_v14 = vld [vmem:[%s2455_s21] sm:$0xff] }
 0x487   :  { %1607 = vmatprep.subr.mxu1 %v1877_v0 }
 0x488   :  { %1608 = vmatpush3.msra.mxu1 %v814_v15  ;;  %v1203_v15 = vld [vmem:[%s2454_s20] ss:$0 sm:$0xff] }
 0x489   :  { %1609 = vmatprep.subr.mxu1 %v1877_v0 }
 0x48a   :  { %1610 = vmatpush3.msra.mxu1 %v813_v16 }
 0x48b   :  { %1611 = vmatprep.subr.mxu1 %v1877_v0 }
 0x48c   :  { %1612 = vmatpush3.msra.mxu1 %v812_v17 }
 0x48d   :  { %1613 = vmatprep.subr.mxu1 %v1877_v0 }
 0x48e   :  { %1614 = vmatpush3.msra.mxu1 %v811_v18 }
 0x48f   :  { %1615 = vmatprep.subr.mxu1 %v1877_v0 }
 0x490   :  { %1616 = vmatpush3.msra.mxu1 %v810_v19 }
 0x491   :  { %1655 = vmatprep.subr.mxu1 %v1877_v0 }
 0x531   :  { %v710_v6 = vpop.f32.mrf.mxu1 }
 0x532   :  { %v711_v7 = vadd.f32 %v1199_v5, %v710_v6 }
 0x533   :  { %v1549_v8 = vpop.f32.mrf.mxu1 }
 0x534   :  { %1729 = vtanh.f32 %v711_v7  ;;  %v1101_v7 = vld [vmem:[%s2455_s21 + $0x38] sm:$0xff]  ;;  %v1100_v8 = vld [vmem:[%s2455_s21 + $0x30] sm:$0xff] }
 0x541   :  { %v1730_v9 = vpop.eup %1729 }
 0x542   :  { %1583 = vmatmul.mubr.f32.vlgmr.msra.gmra.mxu0 %v1730_v9  ;;  %v1099_v9 = vld [vmem:[%s2455_s21 + $0x28] sm:$0xff] }
 0x543   :  { %1652 = vmatprep.mubr.msk.f32.mxu0 %vm1878_vm0, %v1877_v0  ;;  %1621 = vmatpush3.msra.mxu0 %v919_v20  ;;  %v1204_v20 = vld [vmem:[%s2456_s22] ss:$0 sm:$0xff] }
 0x544   :  { %1622 = vmatprep.subr.mxu0 %v1877_v0 }
 0x545   :  { %1623 = vmatpush3.msra.mxu0 %v918_v21 }
 0x546   :  { %1624 = vmatprep.subr.mxu0 %v1877_v0 }
 0x547   :  { %1625 = vmatpush3.msra.mxu0 %v917_v22 }
 0x548   :  { %1626 = vmatprep.subr.mxu0 %v1877_v0 }
 0x549   :  { %1627 = vmatpush3.msra.mxu0 %v916_v23 }
 0x54a   :  { %1628 = vmatprep.subr.mxu0 %v1877_v0 }
 0x54b   :  { %1629 = vmatpush3.msra.mxu0 %v915_v24 }
 0x54c   :  { %1630 = vmatprep.subr.mxu0 %v1877_v0 }
 0x54d   :  { %1631 = vmatpush3.msra.mxu0 %v914_v25 }
 0x54e   :  { %1632 = vmatprep.subr.mxu0 %v1877_v0 }
 0x54f   :  { %1633 = vmatpush3.msra.mxu0 %v913_v26 }
 0x550   :  { %1634 = vmatprep.subr.mxu0 %v1877_v0 }
 0x551   :  { %1635 = vmatpush3.msra.mxu0 %v912_v35 }
 0x552   :  { %1636 = vmatprep.subr.mxu0 %v1877_v0 }
 0x553   :  { %1637 = vmatpush3.msra.mxu0 %v911_v36 }
 0x554   :  { %1638 = vmatprep.subr.mxu0 %v1877_v0 }
 0x555   :  { %1639 = vmatpush3.msra.mxu0 %v910_v30 }
 0x556   :  { %1640 = vmatprep.subr.mxu0 %v1877_v0 }
 0x557   :  { %1641 = vmatpush3.msra.mxu0 %v909_v37 }
 0x558   :  { %1642 = vmatprep.subr.mxu0 %v1877_v0 }
 0x602   :  { %v804_v28 = vpop.f32.mrf.mxu0 }
 0x603   :  { %v805_v29 = vadd.f32 %v1200_v27, %v804_v28 }
 0x604   :  { %v1584_v31 = vpop.f32.mrf.mxu0 }
 0x605   :  { %v808_v33 = vadd.f32 %v2240_v32, %v805_v29  ;;  %v908_v32 = vld [vmem:[#allocation10 + $0x20] sm:$0xff] }
 0x606   :  { %1643 = vmatpush3.msra.mxu0 %v908_v32 }
 0x607   :  { %1731 = vtanh.f32 %v808_v33  ;;  %1644 = vmatprep.subr.mxu0 %v1877_v0 }
 0x608   :  { %1645 = vmatpush3.msra.mxu0 %v907_v38 }
 0x609   :  { %1646 = vmatprep.subr.mxu0 %v1877_v0 }
 0x60a   :  { %1647 = vmatpush3.msra.mxu0 %v906_v39 }
 0x60b   :  { %1648 = vmatprep.subr.mxu0 %v1877_v0 }
 0x60c   :  { %1649 = vmatpush3.msra.mxu0 %v905_v40 }
 0x60d   :  { %1650 = vmatprep.subr.mxu0 %v1877_v0 }
 0x60e   :  { %1651 = vmatpush3.msra.mxu0 %v904_v41 }
 0x60f   :  { %1690 = vmatprep.subr.mxu0 %v1877_v0 }
 0x614   :  { %v2307_v34 = vpop.eup %1731 }
 0x615   :  { %1618 = vmatmul.mubr.f32.vlgmr.msra.gmra.mxu1 %v2307_v34 }
 0x616   :  { %1687 = vmatprep.mubr.msk.f32.mxu1 %vm1878_vm0, %v1877_v0  ;;  %1656 = vmatpush3.msra.mxu1 %v1015_v47 }
 0x617   :  { %1657 = vmatprep.subr.mxu1 %v1877_v0 }
 0x618   :  { %1658 = vmatpush3.msra.mxu1 %v1014_v48 }
 0x619   :  { %1659 = vmatprep.subr.mxu1 %v1877_v0 }
 0x61a   :  { %1660 = vmatpush3.msra.mxu1 %v1013_v49 }
 0x61b   :  { %1661 = vmatprep.subr.mxu1 %v1877_v0 }
 0x61c   :  { %1662 = vmatpush3.msra.mxu1 %v1012_v50 }
 0x61d   :  { %1663 = vmatprep.subr.mxu1 %v1877_v0 }
 0x61e   :  { %1664 = vmatpush3.msra.mxu1 %v1011_v51 }
 0x61f   :  { %1665 = vmatprep.subr.mxu1 %v1877_v0 }
 0x620   :  { %1666 = vmatpush3.msra.mxu1 %v1010_v52 }
 0x621   :  { %1667 = vmatprep.subr.mxu1 %v1877_v0 }
 0x622   :  { %1668 = vmatpush3.msra.mxu1 %v1009_v53 }
 0x623   :  { %1669 = vmatprep.subr.mxu1 %v1877_v0 }
 0x624   :  { %1670 = vmatpush3.msra.mxu1 %v1008_v54 }
 0x625   :  { %1671 = vmatprep.subr.mxu1 %v1877_v0 }
 0x626   :  { %1672 = vmatpush3.msra.mxu1 %v1007_v55 }
 0x627   :  { %1673 = vmatprep.subr.mxu1 %v1877_v0 }
 0x628   :  { %1674 = vmatpush3.msra.mxu1 %v1006_v56 }
 0x629   :  { %1675 = vmatprep.subr.mxu1 %v1877_v0 }
 0x62a   :  { %1676 = vmatpush3.msra.mxu1 %v1005_v57 }
 0x62b   :  { %1677 = vmatprep.subr.mxu1 %v1877_v0 }
 0x62c   :  { %1678 = vmatpush3.msra.mxu1 %v1004_v58 }
 0x62d   :  { %1679 = vmatprep.subr.mxu1 %v1877_v0 }
 0x62e   :  { %1680 = vmatpush3.msra.mxu1 %v1003_v59 }
 0x62f   :  { %1681 = vmatprep.subr.mxu1 %v1877_v0 }
 0x630   :  { %1682 = vmatpush3.msra.mxu1 %v1002_v60 }
 0x631   :  { %1683 = vmatprep.subr.mxu1 %v1877_v0 }
 0x632   :  { %1684 = vmatpush3.msra.mxu1 %v1001_v61 }
 0x633   :  { %1685 = vmatprep.subr.mxu1 %v1877_v0 }
 0x634   :  { %1686 = vmatpush3.msra.mxu1 %v1000_v62 }
 0x6d5   :  { %v899_v43 = vpop.f32.mrf.mxu1 }
 0x6d6   :  { %v900_v44 = vadd.f32 %v1201_v42, %v899_v43 }
 0x6d7   :  { %v1619_v45 = vpop.f32.mrf.mxu1 }
 0x6d8   :  { %1733 = vtanh.f32 %v900_v44 }
 0x6e5   :  { %v1734_v46 = vpop.eup %1733 }
 0x6e6   :  { %1653 = vmatmul.mubr.f32.vlgmr.msra.gmra.mxu0 %v1734_v46 }
 0x6e7   :  { %1706 = vmatprep.mubr.msk.f32.mxu0 %vm1878_vm0, %v1877_v0  ;;  %1691 = vmatpush3.msra.mxu0 %v1101_v7 }
 0x6e8   :  { %1692 = vmatprep.subr.mxu0 %v1877_v0 }
 0x6e9   :  { %1693 = vmatpush3.msra.mxu0 %v1100_v8 }
 0x6ea   :  { %1694 = vmatprep.subr.mxu0 %v1877_v0 }
 0x6eb   :  { %1695 = vmatpush3.msra.mxu0 %v1099_v9 }
 0x6ec   :  { %1696 = vmatprep.subr.mxu0 %v1877_v0 }
 0x6ed   :  { %1697 = vmatpush3.msra.mxu0 %v1098_v10 }
 0x6ee   :  { %1698 = vmatprep.subr.mxu0 %v1877_v0 }
 0x6ef   :  { %1699 = vmatpush3.msra.mxu0 %v1097_v11 }
 0x6f0   :  { %1700 = vmatprep.subr.mxu0 %v1877_v0 }
 0x6f1   :  { %1701 = vmatpush3.msra.mxu0 %v1096_v12 }
 0x6f2   :  { %1702 = vmatprep.subr.mxu0 %v1877_v0 }
 0x6f3   :  { %1703 = vmatpush3.msra.mxu0 %v1095_v13 }
 0x6f4   :  { %1704 = vmatprep.subr.mxu0 %v1877_v0 }
 0x6f5   :  { %1705 = vmatpush3.msra.mxu0 %v1094_v14 }
 0x7a6   :  { %v993_v1 = vpop.f32.mrf.mxu0 }
 0x7a7   :  { %v994_v2 = vadd.f32 %v1202_v63, %v993_v1 }
 0x7a8   :  { %v1654_v3 = vpop.f32.mrf.mxu0 }
 0x7a9   :  { %1735 = vtanh.f32 %v994_v2 }
 0x7b6   :  { %v1736_v4 = vpop.eup %1735 }
 0x7b7   :  { %v998_v5 = vadd.f32 %v1736_v4, %v2307_v34 }
 0x7b9   :  { %1737 = vtanh.f32 %v998_v5 }
 0x7c6   :  { %v1738_v6 = vpop.eup %1737 }
 0x7c7   :  { %1688 = vmatmul.mubr.f32.vlgmr.msra.gmra.mxu1 %v1738_v6 }
 0x887   :  { %v1089_v16 = vpop.f32.mrf.mxu1 }
 0x888   :  { %v1090_v17 = vadd.f32 %v1203_v15, %v1089_v16 }
 0x889   :  { %v1689_v18 = vpop.f32.mrf.mxu1 }
 0x88a   :  { %1739 = vtanh.f32 %v1090_v17 }
 0x897   :  { %v1740_v19 = vpop.eup %1739 }
 0x898   :  { %1707 = vmatmul.mubr.msk.f32.vlgmr.msra.gmra.mxu0 %vm1109_vm3, %v1740_v19 }
 0x958   :  { %v1179_v21 = vpop.f32.mrf.mxu0 }
 0x959   :  { %v1180_v22 = vadd.f32 %v1204_v20, %v1179_v21 }
 0x95a   :  { %v1708_v23 = vpop.f32.mrf.mxu0 }
 0x95b   :  { %1183 = vst.msk [vmem:[%s2457_s23] sm:$0xff] %vm165_vm2, %v1180_v22 }
 0x95c   :  { %1188 = vsyncpa [#allocation3], 1 }
 0x95d   :  { %1189 = vsyncpa [#allocation5], 1 }
 0x95e   :  { %1190 = vsyncpa [#allocation8], 1 }
 0x95f   :  { %1191 = vsyncpa [#allocation11], 1 }

// kernel: tpu_custom_call.1
= control target key start
LH: loop header
LB: loop body
LE: loop exit
PB: predicated region body
PF: predicated region fallthrough
CT: control target
= control target key end

     0   :  { %s2434_s0 = inlined_call_operand.vmem [shape: f32[8,2], index: 0, kind: input, shape index: {}]   ;;  %s2435_s1 = inlined_call_operand.vmem [shape: f32[2,128], index: 1, kind: input, shape index: {}]   ;;  %s2436_s2 = inlined_call_operand.vmem [shape: f32[1,128], index: 2, kind: input, shape index: {}]   ;;  %s2437_s3 = inlined_call_operand.vmem [shape: f32[128,128], index: 3, kind: input, shape index: {}]   ;;  %s2438_s4 = inlined_call_operand.vmem [shape: f32[1,128], index: 4, kind: input, shape index: {}]   ;;  %s2439_s5 = inlined_call_operand.vmem [shape: f32[128,128], index: 5, kind: input, shape index: {}]   ;;  %s2440_s6 = inlined_call_operand.vmem [shape: f32[1,128], index: 6, kind: input, shape index: {}]   ;;  %s2441_s7 = inlined_call_operand.hbm [shape: f32[128,128], index: 7, kind: input, shape index: {}]   ;;  %s2442_s8 = inlined_call_operand.vmem [shape: f32[1,128], index: 8, kind: input, shape index: {}]   ;;  %s2443_s9 = inlined_call_operand.hbm [shape: f32[128,128], index: 9, kind: input, shape index: {}]   ;;  %s2444_s10 = inlined_call_operand.vmem [shape: f32[1,128], index: 10, kind: input, shape index: {}]   ;;  %s2445_s11 = inlined_call_operand.hbm [shape: f32[128,128], index: 11, kind: input, shape index: {}]   ;;  %s2446_s12 = inlined_call_operand.vmem [shape: f32[1,128], index: 12, kind: input, shape index: {}]   ;;  %s2447_s13 = inlined_call_operand.hbm [shape: f32[128,128], index: 13, kind: input, shape index: {}]   ;;  %s2448_s14 = inlined_call_operand.vmem [shape: f32[1,128], index: 14, kind: input, shape index: {}]   ;;  %s2449_s15 = inlined_call_operand.hbm [shape: f32[128,128], index: 15, kind: input, shape index: {}]   ;;  %s2450_s16 = inlined_call_operand.vmem [shape: f32[1,128], index: 16, kind: input, shape index: {}]   ;;  %s2451_s17 = inlined_call_operand.hbm [shape: f32[128,128], index: 17, kind: input, shape index: {}]   ;;  %s2452_s18 = inlined_call_operand.vmem [shape: f32[1,128], index: 18, kind: input, shape index: {}]   ;;  %s2453_s19 = inlined_call_operand.vmem [shape: f32[128,64], index: 19, kind: input, shape index: {}]   ;;  %s2454_s20 = inlined_call_operand.vmem [shape: f32[1,64], index: 20, kind: input, shape index: {}]   ;;  %s2455_s21 = inlined_call_operand.vmem [shape: f32[64,2], index: 21, kind: input, shape index: {}]   ;;  %s2456_s22 = inlined_call_operand.vmem [shape: f32[1,2], index: 22, kind: input, shape index: {}]   ;;  %s2457_s23 = inlined_call_operand.vmem [shape: f32[8,2], index: 23, kind: output, shape index: {}]  }
   0x1   :  { %2460 = sst [smem:[#allocation16_spill]] %s2434_s0 }
   0x2   :  { %2461 = sst [smem:[#allocation17_spill]] %s2435_s1 }
   0x3   :  { %2462 = sst [smem:[#allocation18_spill]] %s2436_s2 }
   0x4   :  { %2463 = sst [smem:[#allocation19_spill]] %s2437_s3 }
   0x5   :  { %2464 = sst [smem:[#allocation20_spill]] %s2438_s4 }
   0x6   :  { %2465 = sst [smem:[#allocation21_spill]] %s2439_s5 }
   0x7   :  { %2466 = sst [smem:[#allocation22_spill]] %s2440_s6 }
   0x8   :  { %2467 = sst [smem:[#allocation23_spill]] %s2441_s7 }
   0x9   :  { %28 = vsyncpa [#allocation3], 0 }
   0xa   :  { %29 = vsyncpa [#allocation5], 0 }
   0xb   :  { %30 = vsyncpa [#allocation8], 0 }
   0xc   :  { %31 = vsyncpa [#allocation11], 0  ;;  %s1869_s4 = smov [#allocation4]   ;;  %s1870_s24 = smov [#allocation7]  }
   0xd   :  { %s65_s30 = sshll.u32 %s1869_s4, 4  ;;  %s93_s25 = sshll.u32 %s1870_s24, 4  ;;  %s66_s30 = int_to_ptr.vmem [resolvable:$true] %s65_s30  ;;  %s94_s25 = int_to_ptr.vmem [resolvable:$true] %s93_s25 }
   0xe   :  { %s1749_s5 = scalar_lea.vmem %s66_s30, 2048  ;;  %p1754_p1 = scmp.lt.s32.totalorder %s66_s30, %s66_s30 }
   0xf   :  { %p1750_p0 = scmp.ne.s32.totalorder %s66_s30, %s1749_s5  ;;  %p1755_p2 = scmp.lt.s32.totalorder %s1749_s5, %s1749_s5 }
  0x11   :  { %p1756_p3 = por %p1755_p2, %p1754_p1 }
  0x13   :  { %p1757_p4 = pnand %p1756_p3, %p1750_p0 }
  0x15   :  { %1760 = shalt.err (!%p1757_p4)
}
  0x16   :  { %s1871_s1 = smov 128   ;;  %s1872_s26 = smov 8  }
  0x17   :  { %71 = dma.hbm_to_vmem [thread:$0]  %s2443_s9, 2048, %s66_s30, [#allocation5], %s1871_s1, %s1871_s1, %s1872_s26  }
  0x18   :  { %s1769_s27 = scalar_lea.vmem %s94_s25, 2048  ;;  %p1774_p6 = scmp.lt.s32.totalorder %s94_s25, %s94_s25 }
  0x19   :  { %p1770_p5 = scmp.ne.s32.totalorder %s94_s25, %s1769_s27  ;;  %p1775_p7 = scmp.lt.s32.totalorder %s1769_s27, %s1769_s27 }
  0x1b   :  { %p1776_p8 = por %p1775_p7, %p1774_p6 }
  0x1d   :  { %p1777_p9 = pnand %p1776_p8, %p1770_p5 }
  0x1f   :  { %1780 = shalt.err (!%p1777_p9)
}
  0x20   :  { %99 = dma.hbm_to_vmem [thread:$0]  %s2447_s13, 2048, %s94_s25, [#allocation8], %s1871_s1, %s1871_s1, %s1872_s26  }
  0x21   :  { %s1873_s29 = smov [#allocation2]   ;;  %s1874_s0 = smov [#allocation6]  }
  0x22   :  { %s51_s3 = sshll.u32 %s1873_s29, 4  ;;  %s79_s4 = sshll.u32 %s1874_s0, 4  ;;  %s52_s3 = int_to_ptr.vmem [resolvable:$true] %s51_s3  ;;  %s80_s4 = int_to_ptr.vmem [resolvable:$true] %s79_s4 }
  0x23   :  { %s1789_s9 = scalar_lea.vmem %s52_s3, 2048  ;;  %p1794_p11 = scmp.lt.s32.totalorder %s52_s3, %s52_s3 }
  0x24   :  { %p1790_p10 = scmp.ne.s32.totalorder %s52_s3, %s1789_s9  ;;  %p1795_p12 = scmp.lt.s32.totalorder %s1789_s9, %s1789_s9 }
  0x26   :  { %p1796_p13 = por %p1795_p12, %p1794_p11 }
  0x28   :  { %p1797_p0 = pnand %p1796_p13, %p1790_p10 }
  0x2a   :  { %1800 = shalt.err (!%p1797_p0)
}
  0x2b   :  { %s2468_s5 = sld [smem:[#allocation23_spill]]  ;;  %s1809_s13 = scalar_lea.vmem %s80_s4, 2048 }
  0x2c   :  { %p1810_p1 = scmp.ne.s32.totalorder %s80_s4, %s1809_s13  ;;  %p1814_p2 = scmp.lt.s32.totalorder %s80_s4, %s80_s4 }
  0x2d   :  { %p1815_p3 = scmp.lt.s32.totalorder %s1809_s13, %s1809_s13 }
  0x2f   :  { %p1816_p4 = por %p1815_p3, %p1814_p2 }
  0x31   :  { %57 = dma.hbm_to_vmem [thread:$0]  %s2468_s5, 2048, %s52_s3, [#allocation3], %s1871_s1, %s1871_s1, %s1872_s26  }
  0x32   :  { %p1817_p5 = pnand %p1816_p4, %p1810_p1 }
  0x34   :  { %1820 = shalt.err (!%p1817_p5)
}
  0x35   :  { %85 = dma.hbm_to_vmem [thread:$0]  %s2445_s11, 2048, %s80_s4, [#allocation5], %s1871_s1, %s1871_s1, %s1872_s26  }
  0x36   :  { %s1875_s6 = smov [#allocation9]   ;;  %s1876_s7 = smov [#allocation10]  }
  0x37   :  { %s107_s27 = sshll.u32 %s1875_s6, 4  ;;  %s121_s28 = sshll.u32 %s1876_s7, 4  ;;  %s108_s27 = int_to_ptr.vmem [resolvable:$true] %s107_s27  ;;  %s122_s28 = int_to_ptr.vmem [resolvable:$true] %s121_s28 }
  0x38   :  { %s1829_s29 = scalar_lea.vmem %s108_s27, 2048  ;;  %p1834_p7 = scmp.lt.s32.totalorder %s108_s27, %s108_s27 }
  0x39   :  { %p1830_p6 = scmp.ne.s32.totalorder %s108_s27, %s1829_s29  ;;  %p1835_p8 = scmp.lt.s32.totalorder %s1829_s29, %s1829_s29 }
  0x3b   :  { %p1836_p9 = por %p1835_p8, %p1834_p7 }
  0x3d   :  { %p1837_p10 = pnand %p1836_p9, %p1830_p6 }
  0x3f   :  { %1840 = shalt.err (!%p1837_p10)
}
  0x40   :  { %113 = dma.hbm_to_vmem [thread:$0]  %s2449_s15, 2048, %s108_s27, [#allocation8], %s1871_s1, %s1871_s1, %s1872_s26  }
  0x41   :  { %s1849_s11 = scalar_lea.vmem %s122_s28, 2048  ;;  %p1854_p12 = scmp.lt.s32.totalorder %s122_s28, %s122_s28 }
  0x42   :  { %p1850_p11 = scmp.ne.s32.totalorder %s122_s28, %s1849_s11  ;;  %p1855_p13 = scmp.lt.s32.totalorder %s1849_s11, %s1849_s11 }
  0x44   :  { %p1856_p0 = por %p1855_p13, %p1854_p12 }
  0x46   :  { %p1857_p1 = pnand %p1856_p0, %p1850_p11 }
  0x48   :  { %1860 = shalt.err (!%p1857_p1)
}
  0x49   :  { %127 = dma.hbm_to_vmem [thread:$0]  %s2451_s17, 2048, %s122_s28, [#allocation11], %s1871_s1, %s1871_s1, %s1872_s26  }
  0x4a   :  { %1861 = dma.done.wait [#allocation3], 2048  }
  0x4b   :  { %1862 = vsyncadd [#allocation3], 4294965248 }
  0x4c   :  { %1863 = dma.done.wait [#allocation5], 4096  }
  0x4d   :  { %1864 = vsyncadd [#allocation5], 4294963200 }
  0x4e   :  { %1865 = dma.done.wait [#allocation8], 4096  }
  0x4f   :  { %1866 = vsyncadd [#allocation8], 4294963200 }
  0x50   :  { %1867 = dma.done.wait [#allocation11], 2048  }
  0x51   :  { %1868 = vsyncadd [#allocation11], 4294965248  ;;  %v1877_v0 = vmov 0.0   ;;  %vm1878_vm0 = vmmov 0   ;;  %vm169_vm1 = vcmask 1041408   ;;  %vm165_vm2 = vcmask 15360  }
  0x52   :  { %1370 = vmatprep.subr.mxu0 %v1877_v0  ;;  %1372 = vmatprep.mubr.msk.f32.mxu0 %vm1878_vm0, %v1877_v0  ;;  %s2469_s1 = sld [smem:[#allocation17_spill]]  ;;  %v447_v40 = vld [vmem:[#allocation2 + $0x78] sm:$0xff]  ;;  %v446_v41 = vld [vmem:[#allocation2 + $0x70] sm:$0xff]  ;;  %v445_v42 = vld [vmem:[#allocation2 + $0x68] sm:$0xff]  ;;  %vm1109_vm3 = vcmask 523264  }
  0x53   :  { %1375 = vmatprep.subr.mxu1 %v1877_v0  ;;  %1407 = vmatprep.mubr.msk.f32.mxu1 %vm1878_vm0, %v1877_v0  ;;  %s2470_s24 = sld [smem:[#allocation16_spill]]  ;;  %v444_v43 = vld [vmem:[#allocation2 + $0x60] sm:$0xff]  ;;  %v443_v44 = vld [vmem:[#allocation2 + $0x58] sm:$0xff]  ;;  %v442_v45 = vld [vmem:[#allocation2 + $0x50] sm:$0xff] }
  0x54   :  { %s2471_s25 = sld [smem:[#allocation19_spill]]  ;;  %v441_v46 = vld [vmem:[#allocation2 + $0x48] sm:$0xff]  ;;  %v440_v52 = vld [vmem:[#allocation2 + $0x40] sm:$0xff]  ;;  %v439_v53 = vld [vmem:[#allocation2 + $0x38] sm:$0xff] }
  0x55   :  { %s2473_s11 = sld [smem:[#allocation18_spill]]  ;;  %v438_v54 = vld [vmem:[#allocation2 + $0x30] sm:$0xff]  ;;  %v437_v55 = vld [vmem:[#allocation2 + $0x28] sm:$0xff]  ;;  %v436_v56 = vld [vmem:[#allocation2 + $0x20] sm:$0xff] }
  0x56   :  { %s2474_s4 = sld [smem:[#allocation20_spill]]  ;;  %v435_v57 = vld [vmem:[#allocation2 + $0x18] sm:$0xff]  ;;  %v434_v58 = vld [vmem:[#allocation2 + $0x10] sm:$0xff]  ;;  %v433_v59 = vld [vmem:[#allocation2 + $0x8] sm:$0xff] }
  0x57   :  { %v432_v60 = vld [vmem:[#allocation2] sm:$0xff]  ;;  %v542_v61 = vld [vmem:[#allocation4 + $0x78] sm:$0xff]  ;;  %v541_v62 = vld [vmem:[#allocation4 + $0x70] sm:$0xff]  ;;  %s2475_s17 = sld [smem:[#allocation22_spill]] }
  0x58   :  { %v157_v1 = vld [vmem:[%s2469_s1] sm:$0x3]  ;;  %s2472_s1 = sld [smem:[#allocation21_spill]]  ;;  %v540_v63 = vld [vmem:[#allocation4 + $0x68] sm:$0xff] }
  0x59   :  { %v156_v2 = vld [vmem:[%s2470_s24] sm:$0xff]  ;;  %1371 = vmatpush3.msk.msra.mxu0 %vm169_vm1, %v157_v1 }
  0x5a   :  { %v259_v3 = vld [vmem:[%s2471_s25 + $0x78] sm:$0xff]  ;;  %v258_v4 = vld [vmem:[%s2471_s25 + $0x70] sm:$0xff]  ;;  %1373 = vmatmul.mubr.msk.f32.vlgmr.msra.gmra.mxu0 %vm165_vm2, %v156_v2  ;;  %v257_v5 = vld [vmem:[%s2471_s25 + $0x68] sm:$0xff]  ;;  %1410 = vmatprep.subr.mxu0 %v1877_v0 }
  0x5b   :  { %1376 = vmatpush3.msra.mxu1 %v259_v3  ;;  %v256_v6 = vld [vmem:[%s2471_s25 + $0x60] sm:$0xff]  ;;  %1442 = vmatprep.mubr.msk.f32.mxu0 %vm1878_vm0, %v1877_v0  ;;  %v255_v7 = vld [vmem:[%s2471_s25 + $0x58] sm:$0xff]  ;;  %v254_v8 = vld [vmem:[%s2471_s25 + $0x50] sm:$0xff] }
  0x5c   :  { %1377 = vmatprep.subr.mxu1 %v1877_v0  ;;  %v253_v9 = vld [vmem:[%s2471_s25 + $0x48] sm:$0xff]  ;;  %v252_v10 = vld [vmem:[%s2471_s25 + $0x40] sm:$0xff]  ;;  %v251_v11 = vld [vmem:[%s2471_s25 + $0x38] sm:$0xff] }
  0x5d   :  { %1378 = vmatpush3.msra.mxu1 %v258_v4  ;;  %v250_v12 = vld [vmem:[%s2471_s25 + $0x30] sm:$0xff]  ;;  %v249_v13 = vld [vmem:[%s2471_s25 + $0x28] sm:$0xff]  ;;  %v248_v14 = vld [vmem:[%s2471_s25 + $0x20] sm:$0xff] }
  0x5e   :  { %1379 = vmatprep.subr.mxu1 %v1877_v0  ;;  %v247_v15 = vld [vmem:[%s2471_s25 + $0x18] sm:$0xff]  ;;  %v246_v16 = vld [vmem:[%s2471_s25 + $0x10] sm:$0xff]  ;;  %v245_v17 = vld [vmem:[%s2471_s25 + $0x8] sm:$0xff] }
  0x5f   :  { %1380 = vmatpush3.msra.mxu1 %v257_v5  ;;  %v244_v18 = vld [vmem:[%s2471_s25] sm:$0xff]  ;;  %v353_v19 = vld [vmem:[%s2472_s1 + $0x78] sm:$0xff]  ;;  %v352_v20 = vld [vmem:[%s2472_s1 + $0x70] sm:$0xff] }
  0x60   :  { %1381 = vmatprep.subr.mxu1 %v1877_v0  ;;  %1411 = vmatpush3.msra.mxu0 %v353_v19  ;;  %v351_v21 = vld [vmem:[%s2472_s1 + $0x68] sm:$0xff]  ;;  %v350_v22 = vld [vmem:[%s2472_s1 + $0x60] sm:$0xff]  ;;  %v349_v23 = vld [vmem:[%s2472_s1 + $0x58] sm:$0xff] }
  0x61   :  { %1382 = vmatpush3.msra.mxu1 %v256_v6  ;;  %1412 = vmatprep.subr.mxu0 %v1877_v0  ;;  %v348_v24 = vld [vmem:[%s2472_s1 + $0x50] sm:$0xff]  ;;  %v347_v25 = vld [vmem:[%s2472_s1 + $0x48] sm:$0xff]  ;;  %v1192_v26 = vld [vmem:[%s2473_s11] ss:$0 sm:$0xff] }
  0x62   :  { %1383 = vmatprep.subr.mxu1 %v1877_v0  ;;  %1413 = vmatpush3.msra.mxu0 %v352_v20  ;;  %v346_v31 = vld [vmem:[%s2472_s1 + $0x40] sm:$0xff]  ;;  %v345_v32 = vld [vmem:[%s2472_s1 + $0x38] sm:$0xff]  ;;  %v344_v33 = vld [vmem:[%s2472_s1 + $0x30] sm:$0xff] }
  0x63   :  { %1384 = vmatpush3.msra.mxu1 %v255_v7  ;;  %1414 = vmatprep.subr.mxu0 %v1877_v0  ;;  %v343_v34 = vld [vmem:[%s2472_s1 + $0x28] sm:$0xff]  ;;  %v342_v35 = vld [vmem:[%s2472_s1 + $0x20] sm:$0xff]  ;;  %v341_v36 = vld [vmem:[%s2472_s1 + $0x18] sm:$0xff] }
  0x64   :  { %1385 = vmatprep.subr.mxu1 %v1877_v0  ;;  %1415 = vmatpush3.msra.mxu0 %v351_v21  ;;  %v340_v37 = vld [vmem:[%s2472_s1 + $0x10] sm:$0xff]  ;;  %v339_v38 = vld [vmem:[%s2472_s1 + $0x8] sm:$0xff]  ;;  %v338_v39 = vld [vmem:[%s2472_s1] sm:$0xff] }
  0x65   :  { %1386 = vmatpush3.msra.mxu1 %v254_v8  ;;  %1416 = vmatprep.subr.mxu0 %v1877_v0  ;;  %v1195_v47 = vld [vmem:[%s2474_s4] ss:$0 sm:$0xff]  ;;  %v538_v2 = vld [vmem:[#allocation4 + $0x58] sm:$0xff]  ;;  %v537_v3 = vld [vmem:[#allocation4 + $0x50] sm:$0xff] }
  0x66   :  { %1387 = vmatprep.subr.mxu1 %v1877_v0  ;;  %1417 = vmatpush3.msra.mxu0 %v350_v22  ;;  %v539_v1 = vld [vmem:[#allocation4 + $0x60] sm:$0xff]  ;;  %v636_v19 = vld [vmem:[#allocation6 + $0x78] sm:$0xff]  ;;  %v635_v20 = vld [vmem:[#allocation6 + $0x70] sm:$0xff] }
  0x67   :  { %1388 = vmatpush3.msra.mxu1 %v253_v9  ;;  %1418 = vmatprep.subr.mxu0 %v1877_v0  ;;  %v1196_v4 = vld [vmem:[%s2475_s17] ss:$0 sm:$0xff]  ;;  %v536_v9 = vld [vmem:[#allocation4 + $0x48] sm:$0xff] }
  0x68   :  { %1389 = vmatprep.subr.mxu1 %v1877_v0  ;;  %1419 = vmatpush3.msra.mxu0 %v349_v23  ;;  %v634_v21 = vld [vmem:[#allocation6 + $0x68] sm:$0xff]  ;;  %v633_v22 = vld [vmem:[#allocation6 + $0x60] sm:$0xff]  ;;  %v632_v23 = vld [vmem:[#allocation6 + $0x58] sm:$0xff] }
  0x69   :  { %1390 = vmatpush3.msra.mxu1 %v252_v10  ;;  %1420 = vmatprep.subr.mxu0 %v1877_v0  ;;  %v535_v10 = vld [vmem:[#allocation4 + $0x40] sm:$0xff] }
  0x6a   :  { %1391 = vmatprep.subr.mxu1 %v1877_v0  ;;  %1421 = vmatpush3.msra.mxu0 %v348_v24  ;;  %v631_v24 = vld [vmem:[#allocation6 + $0x50] sm:$0xff] }
  0x6b   :  { %1392 = vmatpush3.msra.mxu1 %v251_v11  ;;  %1422 = vmatprep.subr.mxu0 %v1877_v0  ;;  %v534_v11 = vld [vmem:[#allocation4 + $0x38] sm:$0xff] }
  0x6c   :  { %1393 = vmatprep.subr.mxu1 %v1877_v0  ;;  %1423 = vmatpush3.msra.mxu0 %v347_v25  ;;  %v630_v25 = vld [vmem:[#allocation6 + $0x48] sm:$0xff] }
  0x6d   :  { %1394 = vmatpush3.msra.mxu1 %v250_v12  ;;  %1424 = vmatprep.subr.mxu0 %v1877_v0  ;;  %v533_v12 = vld [vmem:[#allocation4 + $0x30] sm:$0xff] }
  0x6e   :  { %1395 = vmatprep.subr.mxu1 %v1877_v0  ;;  %1425 = vmatpush3.msra.mxu0 %v346_v31 }
  0x6f   :  { %1396 = vmatpush3.msra.mxu1 %v249_v13  ;;  %1426 = vmatprep.subr.mxu0 %v1877_v0  ;;  %v532_v13 = vld [vmem:[#allocation4 + $0x28] sm:$0xff] }
  0x70   :  { %1397 = vmatprep.subr.mxu1 %v1877_v0  ;;  %1427 = vmatpush3.msra.mxu0 %v345_v32 }
  0x71   :  { %1398 = vmatpush3.msra.mxu1 %v248_v14  ;;  %1428 = vmatprep.subr.mxu0 %v1877_v0  ;;  %v531_v14 = vld [vmem:[#allocation4 + $0x20] sm:$0xff] }
  0x72   :  { %1399 = vmatprep.subr.mxu1 %v1877_v0  ;;  %1429 = vmatpush3.msra.mxu0 %v344_v33  ;;  %v629_v33 = vld [vmem:[#allocation6 + $0x40] sm:$0xff] }
  0x73   :  { %1400 = vmatpush3.msra.mxu1 %v247_v15  ;;  %1430 = vmatprep.subr.mxu0 %v1877_v0  ;;  %v530_v15 = vld [vmem:[#allocation4 + $0x18] sm:$0xff] }
  0x74   :  { %1401 = vmatprep.subr.mxu1 %v1877_v0  ;;  %1431 = vmatpush3.msra.mxu0 %v343_v34  ;;  %v628_v34 = vld [vmem:[#allocation6 + $0x38] sm:$0xff] }
  0x75   :  { %1402 = vmatpush3.msra.mxu1 %v246_v16  ;;  %1432 = vmatprep.subr.mxu0 %v1877_v0  ;;  %v529_v16 = vld [vmem:[#allocation4 + $0x10] sm:$0xff] }
  0x76   :  { %1403 = vmatprep.subr.mxu1 %v1877_v0  ;;  %1433 = vmatpush3.msra.mxu0 %v342_v35  ;;  %v627_v35 = vld [vmem:[#allocation6 + $0x30] sm:$0xff] }
  0x77   :  { %1404 = vmatpush3.msra.mxu1 %v245_v17  ;;  %1434 = vmatprep.subr.mxu0 %v1877_v0  ;;  %v528_v17 = vld [vmem:[#allocation4 + $0x8] sm:$0xff] }
  0x78   :  { %1405 = vmatprep.subr.mxu1 %v1877_v0  ;;  %1435 = vmatpush3.msra.mxu0 %v341_v36  ;;  %v626_v36 = vld [vmem:[#allocation6 + $0x28] sm:$0xff] }
  0x79   :  { %1406 = vmatpush3.msra.mxu1 %v244_v18  ;;  %1436 = vmatprep.subr.mxu0 %v1877_v0  ;;  %v527_v18 = vld [vmem:[#allocation4] sm:$0xff] }
  0x7a   :  { %1445 = vmatprep.subr.mxu1 %v1877_v0  ;;  %1437 = vmatpush3.msra.mxu0 %v340_v37  ;;  %v624_v37 = vld [vmem:[#allocation6 + $0x18] sm:$0xff] }
  0x7b   :  { %1438 = vmatprep.subr.mxu0 %v1877_v0 }
  0x7c   :  { %1439 = vmatpush3.msra.mxu0 %v339_v38  ;;  %v623_v38 = vld [vmem:[#allocation6 + $0x10] sm:$0xff] }
  0x7d   :  { %1440 = vmatprep.subr.mxu0 %v1877_v0 }
  0x7e   :  { %1441 = vmatpush3.msra.mxu0 %v338_v39  ;;  %v622_v39 = vld [vmem:[#allocation6 + $0x8] sm:$0xff] }
  0x7f   :  { %1480 = vmatprep.subr.mxu0 %v1877_v0 }
 0x11a   :  { %v239_v27 = vpop.f32.mrf.mxu0 }
 0x11b   :  { %v240_v28 = vadd.f32 %v1192_v26, %v239_v27  ;;  %v1197_v26 = vld [vmem:[%s2442_s8] ss:$0 sm:$0xff] }
 0x11c   :  { %v1374_v29 = vpop.f32.mrf.mxu0 }
 0x11d   :  { %1719 = vtanh.f32 %v240_v28 }
 0x12a   :  { %v2146_v30 = vpop.eup %1719 }
 0x12b   :  { %1408 = vmatmul.mubr.f32.vlgmr.msra.gmra.mxu1 %v2146_v30 }
 0x12c   :  { %1477 = vmatprep.mubr.msk.f32.mxu1 %vm1878_vm0, %v1877_v0  ;;  %1446 = vmatpush3.msra.mxu1 %v447_v40  ;;  %v621_v40 = vld [vmem:[#allocation6] sm:$0xff] }
 0x12d   :  { %1447 = vmatprep.subr.mxu1 %v1877_v0 }
 0x12e   :  { %1448 = vmatpush3.msra.mxu1 %v446_v41  ;;  %v730_v41 = vld [vmem:[#allocation7 + $0x78] sm:$0xff] }
 0x12f   :  { %1449 = vmatprep.subr.mxu1 %v1877_v0 }
 0x130   :  { %1450 = vmatpush3.msra.mxu1 %v445_v42  ;;  %v729_v42 = vld [vmem:[#allocation7 + $0x70] sm:$0xff] }
 0x131   :  { %1451 = vmatprep.subr.mxu1 %v1877_v0 }
 0x132   :  { %1452 = vmatpush3.msra.mxu1 %v444_v43  ;;  %v728_v43 = vld [vmem:[#allocation7 + $0x68] sm:$0xff] }
 0x133   :  { %1453 = vmatprep.subr.mxu1 %v1877_v0 }
 0x134   :  { %1454 = vmatpush3.msra.mxu1 %v443_v44  ;;  %v727_v44 = vld [vmem:[#allocation7 + $0x60] sm:$0xff] }
 0x135   :  { %1455 = vmatprep.subr.mxu1 %v1877_v0 }
 0x136   :  { %1456 = vmatpush3.msra.mxu1 %v442_v45  ;;  %v726_v45 = vld [vmem:[#allocation7 + $0x58] sm:$0xff] }
 0x137   :  { %1457 = vmatprep.subr.mxu1 %v1877_v0 }
 0x138   :  { %1458 = vmatpush3.msra.mxu1 %v441_v46  ;;  %v725_v46 = vld [vmem:[#allocation7 + $0x50] sm:$0xff] }
 0x139   :  { %1459 = vmatprep.subr.mxu1 %v1877_v0 }
 0x13a   :  { %1460 = vmatpush3.msra.mxu1 %v440_v52 }
 0x13b   :  { %1461 = vmatprep.subr.mxu1 %v1877_v0 }
 0x13c   :  { %1462 = vmatpush3.msra.mxu1 %v439_v53  ;;  %v723_v53 = vld [vmem:[#allocation7 + $0x40] sm:$0xff] }
 0x13d   :  { %1463 = vmatprep.subr.mxu1 %v1877_v0 }
 0x13e   :  { %1464 = vmatpush3.msra.mxu1 %v438_v54  ;;  %v722_v54 = vld [vmem:[#allocation7 + $0x38] sm:$0xff] }
 0x13f   :  { %1465 = vmatprep.subr.mxu1 %v1877_v0 }
 0x140   :  { %1466 = vmatpush3.msra.mxu1 %v437_v55  ;;  %v721_v55 = vld [vmem:[#allocation7 + $0x30] sm:$0xff] }
 0x141   :  { %1467 = vmatprep.subr.mxu1 %v1877_v0 }
 0x142   :  { %1468 = vmatpush3.msra.mxu1 %v436_v56  ;;  %v720_v56 = vld [vmem:[#allocation7 + $0x28] sm:$0xff] }
 0x143   :  { %1469 = vmatprep.subr.mxu1 %v1877_v0 }
 0x144   :  { %1470 = vmatpush3.msra.mxu1 %v435_v57  ;;  %v719_v57 = vld [vmem:[#allocation7 + $0x20] sm:$0xff] }
 0x145   :  { %1471 = vmatprep.subr.mxu1 %v1877_v0 }
 0x146   :  { %1472 = vmatpush3.msra.mxu1 %v434_v58  ;;  %v718_v58 = vld [vmem:[#allocation7 + $0x18] sm:$0xff] }
 0x147   :  { %1473 = vmatprep.subr.mxu1 %v1877_v0 }
 0x148   :  { %1474 = vmatpush3.msra.mxu1 %v433_v59  ;;  %v717_v59 = vld [vmem:[#allocation7 + $0x10] sm:$0xff] }
 0x149   :  { %1475 = vmatprep.subr.mxu1 %v1877_v0 }
 0x14a   :  { %1476 = vmatpush3.msra.mxu1 %v432_v60  ;;  %v716_v60 = vld [vmem:[#allocation7 + $0x8] sm:$0xff] }
 0x14b   :  { %1515 = vmatprep.subr.mxu1 %v1877_v0 }
 0x1eb   :  { %v333_v48 = vpop.f32.mrf.mxu1 }
 0x1ec   :  { %v334_v49 = vadd.f32 %v1195_v47, %v333_v48  ;;  %v724_v47 = vld [vmem:[#allocation7 + $0x48] sm:$0xff]  ;;  %v1198_v48 = vld [vmem:[%s2444_s10] ss:$0 sm:$0xff] }
 0x1ed   :  { %v1409_v50 = vpop.f32.mrf.mxu1 }
 0x1ee   :  { %1721 = vtanh.f32 %v334_v49 }
 0x1fb   :  { %v1722_v51 = vpop.eup %1721 }
 0x1fc   :  { %1443 = vmatmul.mubr.f32.vlgmr.msra.gmra.mxu0 %v1722_v51 }
 0x1fd   :  { %1512 = vmatprep.mubr.msk.f32.mxu0 %vm1878_vm0, %v1877_v0  ;;  %1481 = vmatpush3.msra.mxu0 %v542_v61  ;;  %v715_v61 = vld [vmem:[#allocation7] sm:$0xff] }
 0x1fe   :  { %1482 = vmatprep.subr.mxu0 %v1877_v0 }
 0x1ff   :  { %1483 = vmatpush3.msra.mxu0 %v541_v62  ;;  %v825_v62 = vld [vmem:[#allocation9 + $0x78] sm:$0xff] }
 0x200   :  { %1484 = vmatprep.subr.mxu0 %v1877_v0 }
 0x201   :  { %1485 = vmatpush3.msra.mxu0 %v540_v63  ;;  %v824_v63 = vld [vmem:[#allocation9 + $0x70] sm:$0xff] }
 0x202   :  { %1486 = vmatprep.subr.mxu0 %v1877_v0 }
 0x203   :  { %1487 = vmatpush3.msra.mxu0 %v539_v1  ;;  %v823_v1 = vld [vmem:[#allocation9 + $0x68] sm:$0xff] }
 0x204   :  { %1488 = vmatprep.subr.mxu0 %v1877_v0 }
 0x205   :  { %1489 = vmatpush3.msra.mxu0 %v538_v2  ;;  %v822_v2 = vld [vmem:[#allocation9 + $0x60] sm:$0xff] }
 0x206   :  { %1490 = vmatprep.subr.mxu0 %v1877_v0 }
 0x207   :  { %1491 = vmatpush3.msra.mxu0 %v537_v3  ;;  %v821_v3 = vld [vmem:[#allocation9 + $0x58] sm:$0xff] }
 0x208   :  { %1492 = vmatprep.subr.mxu0 %v1877_v0 }
 0x209   :  { %1493 = vmatpush3.msra.mxu0 %v536_v9 }
 0x20a   :  { %1494 = vmatprep.subr.mxu0 %v1877_v0 }
 0x20b   :  { %1495 = vmatpush3.msra.mxu0 %v535_v10  ;;  %v819_v10 = vld [vmem:[#allocation9 + $0x48] sm:$0xff] }
 0x20c   :  { %1496 = vmatprep.subr.mxu0 %v1877_v0 }
 0x20d   :  { %1497 = vmatpush3.msra.mxu0 %v534_v11  ;;  %v818_v11 = vld [vmem:[#allocation9 + $0x40] sm:$0xff] }
 0x20e   :  { %1498 = vmatprep.subr.mxu0 %v1877_v0 }
 0x20f   :  { %1499 = vmatpush3.msra.mxu0 %v533_v12  ;;  %v817_v12 = vld [vmem:[#allocation9 + $0x38] sm:$0xff] }
 0x210   :  { %1500 = vmatprep.subr.mxu0 %v1877_v0 }
 0x211   :  { %1501 = vmatpush3.msra.mxu0 %v532_v13  ;;  %v816_v13 = vld [vmem:[#allocation9 + $0x30] sm:$0xff] }
 0x212   :  { %1502 = vmatprep.subr.mxu0 %v1877_v0 }
 0x213   :  { %1503 = vmatpush3.msra.mxu0 %v531_v14  ;;  %v815_v14 = vld [vmem:[#allocation9 + $0x28] sm:$0xff] }
 0x214   :  { %1504 = vmatprep.subr.mxu0 %v1877_v0 }
 0x215   :  { %1505 = vmatpush3.msra.mxu0 %v530_v15  ;;  %v814_v15 = vld [vmem:[#allocation9 + $0x20] sm:$0xff] }
 0x216   :  { %1506 = vmatprep.subr.mxu0 %v1877_v0 }
 0x217   :  { %1507 = vmatpush3.msra.mxu0 %v529_v16  ;;  %v813_v16 = vld [vmem:[#allocation9 + $0x18] sm:$0xff] }
 0x218   :  { %1508 = vmatprep.subr.mxu0 %v1877_v0 }
 0x219   :  { %1509 = vmatpush3.msra.mxu0 %v528_v17  ;;  %v812_v17 = vld [vmem:[#allocation9 + $0x10] sm:$0xff] }
 0x21a   :  { %1510 = vmatprep.subr.mxu0 %v1877_v0 }
 0x21b   :  { %1511 = vmatpush3.msra.mxu0 %v527_v18  ;;  %v811_v18 = vld [vmem:[#allocation9 + $0x8] sm:$0xff] }
 0x21c   :  { %1550 = vmatprep.subr.mxu0 %v1877_v0 }
 0x2bc   :  { %v427_v5 = vpop.f32.mrf.mxu0 }
 0x2bd   :  { %v428_v6 = vadd.f32 %v1196_v4, %v427_v5  ;;  %v820_v4 = vld [vmem:[#allocation9 + $0x50] sm:$0xff]  ;;  %v1199_v5 = vld [vmem:[%s2446_s12] ss:$0 sm:$0xff] }
 0x2be   :  { %v1444_v7 = vpop.f32.mrf.mxu0 }
 0x2bf   :  { %1723 = vtanh.f32 %v428_v6 }
 0x2cc   :  { %v1724_v8 = vpop.eup %1723 }
 0x2cd   :  { %1478 = vmatmul.mubr.f32.vlgmr.msra.gmra.mxu1 %v1724_v8 }
 0x2ce   :  { %1547 = vmatprep.mubr.msk.f32.mxu1 %vm1878_vm0, %v1877_v0  ;;  %1516 = vmatpush3.msra.mxu1 %v636_v19  ;;  %v810_v19 = vld [vmem:[#allocation9] sm:$0xff] }
 0x2cf   :  { %1517 = vmatprep.subr.mxu1 %v1877_v0 }
 0x2d0   :  { %1518 = vmatpush3.msra.mxu1 %v635_v20  ;;  %v919_v20 = vld [vmem:[#allocation10 + $0x78] sm:$0xff] }
 0x2d1   :  { %1519 = vmatprep.subr.mxu1 %v1877_v0 }
 0x2d2   :  { %1520 = vmatpush3.msra.mxu1 %v634_v21  ;;  %v918_v21 = vld [vmem:[#allocation10 + $0x70] sm:$0xff] }
 0x2d3   :  { %1521 = vmatprep.subr.mxu1 %v1877_v0 }
 0x2d4   :  { %1522 = vmatpush3.msra.mxu1 %v633_v22  ;;  %v917_v22 = vld [vmem:[#allocation10 + $0x68] sm:$0xff] }
 0x2d5   :  { %1523 = vmatprep.subr.mxu1 %v1877_v0 }
 0x2d6   :  { %1524 = vmatpush3.msra.mxu1 %v632_v23  ;;  %v916_v23 = vld [vmem:[#allocation10 + $0x60] sm:$0xff] }
 0x2d7   :  { %1525 = vmatprep.subr.mxu1 %v1877_v0 }
 0x2d8   :  { %1526 = vmatpush3.msra.mxu1 %v631_v24  ;;  %v915_v24 = vld [vmem:[#allocation10 + $0x58] sm:$0xff] }
 0x2d9   :  { %1527 = vmatprep.subr.mxu1 %v1877_v0 }
 0x2da   :  { %1528 = vmatpush3.msra.mxu1 %v630_v25  ;;  %v914_v25 = vld [vmem:[#allocation10 + $0x50] sm:$0xff] }
 0x2db   :  { %1529 = vmatprep.subr.mxu1 %v1877_v0 }
 0x2dc   :  { %1530 = vmatpush3.msra.mxu1 %v629_v33 }
 0x2dd   :  { %1531 = vmatprep.subr.mxu1 %v1877_v0 }
 0x2de   :  { %1532 = vmatpush3.msra.mxu1 %v628_v34 }
 0x2df   :  { %1533 = vmatprep.subr.mxu1 %v1877_v0 }
 0x2e0   :  { %1534 = vmatpush3.msra.mxu1 %v627_v35  ;;  %v912_v35 = vld [vmem:[#allocation10 + $0x40] sm:$0xff] }
 0x2e1   :  { %1535 = vmatprep.subr.mxu1 %v1877_v0 }
 0x2e2   :  { %1536 = vmatpush3.msra.mxu1 %v626_v36  ;;  %v911_v36 = vld [vmem:[#allocation10 + $0x38] sm:$0xff] }
 0x2e3   :  { %1537 = vmatprep.subr.mxu1 %v1877_v0 }
 0x38d   :  { %v521_v27 = vpop.f32.mrf.mxu1 }
 0x38e   :  { %v522_v28 = vadd.f32 %v1197_v26, %v521_v27  ;;  %v913_v26 = vld [vmem:[#allocation10 + $0x48] sm:$0xff]  ;;  %v1200_v27 = vld [vmem:[%s2448_s14] ss:$0 sm:$0xff] }
 0x38f   :  { %v1479_v29 = vpop.f32.mrf.mxu1 }
 0x390   :  { %v525_v31 = vadd.f32 %v2146_v30, %v522_v28  ;;  %v625_v30 = vld [vmem:[#allocation6 + $0x20] sm:$0xff] }
 0x391   :  { %1538 = vmatpush3.msra.mxu1 %v625_v30  ;;  %v910_v30 = vld [vmem:[#allocation10 + $0x30] sm:$0xff] }
 0x392   :  { %1725 = vtanh.f32 %v525_v31  ;;  %1539 = vmatprep.subr.mxu1 %v1877_v0 }
 0x393   :  { %1540 = vmatpush3.msra.mxu1 %v624_v37  ;;  %v909_v37 = vld [vmem:[#allocation10 + $0x28] sm:$0xff] }
 0x394   :  { %1541 = vmatprep.subr.mxu1 %v1877_v0 }
 0x395   :  { %1542 = vmatpush3.msra.mxu1 %v623_v38  ;;  %v907_v38 = vld [vmem:[#allocation10 + $0x18] sm:$0xff] }
 0x396   :  { %1543 = vmatprep.subr.mxu1 %v1877_v0 }
 0x397   :  { %1544 = vmatpush3.msra.mxu1 %v622_v39  ;;  %v906_v39 = vld [vmem:[#allocation10 + $0x10] sm:$0xff] }
 0x398   :  { %1545 = vmatprep.subr.mxu1 %v1877_v0 }
 0x399   :  { %1546 = vmatpush3.msra.mxu1 %v621_v40  ;;  %v905_v40 = vld [vmem:[#allocation10 + $0x8] sm:$0xff] }
 0x39a   :  { %1585 = vmatprep.subr.mxu1 %v1877_v0 }
 0x39f   :  { %v2240_v32 = vpop.eup %1725 }
 0x3a0   :  { %1513 = vmatmul.mubr.f32.vlgmr.msra.gmra.mxu0 %v2240_v32 }
 0x3a1   :  { %1582 = vmatprep.mubr.msk.f32.mxu0 %vm1878_vm0, %v1877_v0  ;;  %1551 = vmatpush3.msra.mxu0 %v730_v41  ;;  %v904_v41 = vld [vmem:[#allocation10] sm:$0xff] }
 0x3a2   :  { %1552 = vmatprep.subr.mxu0 %v1877_v0 }
 0x3a3   :  { %1553 = vmatpush3.msra.mxu0 %v729_v42  ;;  %v1201_v42 = vld [vmem:[%s2450_s16] ss:$0 sm:$0xff] }
 0x3a4   :  { %1554 = vmatprep.subr.mxu0 %v1877_v0 }
 0x3a5   :  { %1555 = vmatpush3.msra.mxu0 %v728_v43 }
 0x3a6   :  { %1556 = vmatprep.subr.mxu0 %v1877_v0 }
 0x3a7   :  { %1557 = vmatpush3.msra.mxu0 %v727_v44 }
 0x3a8   :  { %1558 = vmatprep.subr.mxu0 %v1877_v0 }
 0x3a9   :  { %1559 = vmatpush3.msra.mxu0 %v726_v45 }
 0x3aa   :  { %1560 = vmatprep.subr.mxu0 %v1877_v0 }
 0x3ab   :  { %1561 = vmatpush3.msra.mxu0 %v725_v46 }
 0x3ac   :  { %1562 = vmatprep.subr.mxu0 %v1877_v0 }
 0x3ad   :  { %1563 = vmatpush3.msra.mxu0 %v724_v47  ;;  %v1015_v47 = vld [vmem:[%s2453_s19 + $0x78] sm:$0xff] }
 0x3ae   :  { %1564 = vmatprep.subr.mxu0 %v1877_v0 }
 0x3af   :  { %1565 = vmatpush3.msra.mxu0 %v723_v53  ;;  %v1009_v53 = vld [vmem:[%s2453_s19 + $0x48] sm:$0xff] }
 0x3b0   :  { %1566 = vmatprep.subr.mxu0 %v1877_v0 }
 0x3b1   :  { %1567 = vmatpush3.msra.mxu0 %v722_v54  ;;  %v1008_v54 = vld [vmem:[%s2453_s19 + $0x40] sm:$0xff] }
 0x3b2   :  { %1568 = vmatprep.subr.mxu0 %v1877_v0 }
 0x3b3   :  { %1569 = vmatpush3.msra.mxu0 %v721_v55  ;;  %v1007_v55 = vld [vmem:[%s2453_s19 + $0x38] sm:$0xff] }
 0x3b4   :  { %1570 = vmatprep.subr.mxu0 %v1877_v0 }
 0x3b5   :  { %1571 = vmatpush3.msra.mxu0 %v720_v56  ;;  %v1006_v56 = vld [vmem:[%s2453_s19 + $0x30] sm:$0xff] }
 0x3b6   :  { %1572 = vmatprep.subr.mxu0 %v1877_v0 }
 0x3b7   :  { %1573 = vmatpush3.msra.mxu0 %v719_v57  ;;  %v1005_v57 = vld [vmem:[%s2453_s19 + $0x28] sm:$0xff] }
 0x3b8   :  { %1574 = vmatprep.subr.mxu0 %v1877_v0 }
 0x3b9   :  { %1575 = vmatpush3.msra.mxu0 %v718_v58  ;;  %v1004_v58 = vld [vmem:[%s2453_s19 + $0x20] sm:$0xff] }
 0x3ba   :  { %1576 = vmatprep.subr.mxu0 %v1877_v0 }
 0x3bb   :  { %1577 = vmatpush3.msra.mxu0 %v717_v59  ;;  %v1003_v59 = vld [vmem:[%s2453_s19 + $0x18] sm:$0xff] }
 0x3bc   :  { %1578 = vmatprep.subr.mxu0 %v1877_v0 }
 0x3bd   :  { %1579 = vmatpush3.msra.mxu0 %v716_v60  ;;  %v1002_v60 = vld [vmem:[%s2453_s19 + $0x10] sm:$0xff] }
 0x3be   :  { %1580 = vmatprep.subr.mxu0 %v1877_v0 }
 0x3bf   :  { %1581 = vmatpush3.msra.mxu0 %v715_v61  ;;  %v1001_v61 = vld [vmem:[%s2453_s19 + $0x8] sm:$0xff] }
 0x3c0   :  { %1620 = vmatprep.subr.mxu0 %v1877_v0 }
 0x460   :  { %v616_v49 = vpop.f32.mrf.mxu0 }
 0x461   :  { %v617_v50 = vadd.f32 %v1198_v48, %v616_v49  ;;  %v1014_v48 = vld [vmem:[%s2453_s19 + $0x70] sm:$0xff]  ;;  %v1013_v49 = vld [vmem:[%s2453_s19 + $0x68] sm:$0xff] }
 0x462   :  { %v1514_v51 = vpop.f32.mrf.mxu0 }
 0x463   :  { %1727 = vtanh.f32 %v617_v50  ;;  %v1012_v50 = vld [vmem:[%s2453_s19 + $0x60] sm:$0xff]  ;;  %v1011_v51 = vld [vmem:[%s2453_s19 + $0x58] sm:$0xff] }
 0x470   :  { %v1728_v52 = vpop.eup %1727 }
 0x471   :  { %1548 = vmatmul.mubr.f32.vlgmr.msra.gmra.mxu1 %v1728_v52  ;;  %v1010_v52 = vld [vmem:[%s2453_s19 + $0x50] sm:$0xff] }
 0x472   :  { %1617 = vmatprep.mubr.msk.f32.mxu1 %vm1878_vm0, %v1877_v0  ;;  %1586 = vmatpush3.msra.mxu1 %v825_v62  ;;  %v1000_v62 = vld [vmem:[%s2453_s19] sm:$0xff] }
 0x473   :  { %1587 = vmatprep.subr.mxu1 %v1877_v0 }
 0x474   :  { %1588 = vmatpush3.msra.mxu1 %v824_v63  ;;  %v1202_v63 = vld [vmem:[%s2452_s18] ss:$0 sm:$0xff] }
 0x475   :  { %1589 = vmatprep.subr.mxu1 %v1877_v0 }
 0x476   :  { %1590 = vmatpush3.msra.mxu1 %v823_v1 }
 0x477   :  { %1591 = vmatprep.subr.mxu1 %v1877_v0 }
 0x478   :  { %1592 = vmatpush3.msra.mxu1 %v822_v2 }
 0x479   :  { %1593 = vmatprep.subr.mxu1 %v1877_v0 }
 0x47a   :  { %1594 = vmatpush3.msra.mxu1 %v821_v3 }
 0x47b   :  { %1595 = vmatprep.subr.mxu1 %v1877_v0 }
 0x47c   :  { %1596 = vmatpush3.msra.mxu1 %v820_v4 }
 0x47d   :  { %1597 = vmatprep.subr.mxu1 %v1877_v0 }
 0x47e   :  { %1598 = vmatpush3.msra.mxu1 %v819_v10  ;;  %v1098_v10 = vld [vmem:[%s2455_s21 + $0x20] sm:$0xff] }
 0x47f   :  { %1599 = vmatprep.subr.mxu1 %v1877_v0 }
 0x480   :  { %1600 = vmatpush3.msra.mxu1 %v818_v11  ;;  %v1097_v11 = vld [vmem:[%s2455_s21 + $0x18] sm:$0xff] }
 0x481   :  { %1601 = vmatprep.subr.mxu1 %v1877_v0 }
 0x482   :  { %1602 = vmatpush3.msra.mxu1 %v817_v12  ;;  %v1096_v12 = vld [vmem:[%s2455_s21 + $0x10] sm:$0xff] }
 0x483   :  { %1603 = vmatprep.subr.mxu1 %v1877_v0 }
 0x484   :  { %1604 = vmatpush3.msra.mxu1 %v816_v13  ;;  %v1095_v13 = vld [vmem:[%s2455_s21 + $0x8] sm:$0xff] }
 0x485   :  { %1605 = vmatprep.subr.mxu1 %v1877_v0 }
 0x486   :  { %1606 = vmatpush3.msra.mxu1 %v815_v14  ;;  %v1094_v14 = vld [vmem:[%s2455_s21] sm:$0xff] }
 0x487   :  { %1607 = vmatprep.subr.mxu1 %v1877_v0 }
 0x488   :  { %1608 = vmatpush3.msra.mxu1 %v814_v15  ;;  %v1203_v15 = vld [vmem:[%s2454_s20] ss:$0 sm:$0xff] }
 0x489   :  { %1609 = vmatprep.subr.mxu1 %v1877_v0 }
 0x48a   :  { %1610 = vmatpush3.msra.mxu1 %v813_v16 }
 0x48b   :  { %1611 = vmatprep.subr.mxu1 %v1877_v0 }
 0x48c   :  { %1612 = vmatpush3.msra.mxu1 %v812_v17 }
 0x48d   :  { %1613 = vmatprep.subr.mxu1 %v1877_v0 }
 0x48e   :  { %1614 = vmatpush3.msra.mxu1 %v811_v18 }
 0x48f   :  { %1615 = vmatprep.subr.mxu1 %v1877_v0 }
 0x490   :  { %1616 = vmatpush3.msra.mxu1 %v810_v19 }
 0x491   :  { %1655 = vmatprep.subr.mxu1 %v1877_v0 }
 0x531   :  { %v710_v6 = vpop.f32.mrf.mxu1 }
 0x532   :  { %v711_v7 = vadd.f32 %v1199_v5, %v710_v6 }
 0x533   :  { %v1549_v8 = vpop.f32.mrf.mxu1 }
 0x534   :  { %1729 = vtanh.f32 %v711_v7  ;;  %v1101_v7 = vld [vmem:[%s2455_s21 + $0x38] sm:$0xff]  ;;  %v1100_v8 = vld [vmem:[%s2455_s21 + $0x30] sm:$0xff] }
 0x541   :  { %v1730_v9 = vpop.eup %1729 }
 0x542   :  { %1583 = vmatmul.mubr.f32.vlgmr.msra.gmra.mxu0 %v1730_v9  ;;  %v1099_v9 = vld [vmem:[%s2455_s21 + $0x28] sm:$0xff] }
 0x543   :  { %1652 = vmatprep.mubr.msk.f32.mxu0 %vm1878_vm0, %v1877_v0  ;;  %1621 = vmatpush3.msra.mxu0 %v919_v20  ;;  %v1204_v20 = vld [vmem:[%s2456_s22] ss:$0 sm:$0xff] }
 0x544   :  { %1622 = vmatprep.subr.mxu0 %v1877_v0 }
 0x545   :  { %1623 = vmatpush3.msra.mxu0 %v918_v21 }
 0x546   :  { %1624 = vmatprep.subr.mxu0 %v1877_v0 }
 0x547   :  { %1625 = vmatpush3.msra.mxu0 %v917_v22 }
 0x548   :  { %1626 = vmatprep.subr.mxu0 %v1877_v0 }
 0x549   :  { %1627 = vmatpush3.msra.mxu0 %v916_v23 }
 0x54a   :  { %1628 = vmatprep.subr.mxu0 %v1877_v0 }
 0x54b   :  { %1629 = vmatpush3.msra.mxu0 %v915_v24 }
 0x54c   :  { %1630 = vmatprep.subr.mxu0 %v1877_v0 }
 0x54d   :  { %1631 = vmatpush3.msra.mxu0 %v914_v25 }
 0x54e   :  { %1632 = vmatprep.subr.mxu0 %v1877_v0 }
 0x54f   :  { %1633 = vmatpush3.msra.mxu0 %v913_v26 }
 0x550   :  { %1634 = vmatprep.subr.mxu0 %v1877_v0 }
 0x551   :  { %1635 = vmatpush3.msra.mxu0 %v912_v35 }
 0x552   :  { %1636 = vmatprep.subr.mxu0 %v1877_v0 }
 0x553   :  { %1637 = vmatpush3.msra.mxu0 %v911_v36 }
 0x554   :  { %1638 = vmatprep.subr.mxu0 %v1877_v0 }
 0x555   :  { %1639 = vmatpush3.msra.mxu0 %v910_v30 }
 0x556   :  { %1640 = vmatprep.subr.mxu0 %v1877_v0 }
 0x557   :  { %1641 = vmatpush3.msra.mxu0 %v909_v37 }
 0x558   :  { %1642 = vmatprep.subr.mxu0 %v1877_v0 }
 0x602   :  { %v804_v28 = vpop.f32.mrf.mxu0 }
 0x603   :  { %v805_v29 = vadd.f32 %v1200_v27, %v804_v28 }
 0x604   :  { %v1584_v31 = vpop.f32.mrf.mxu0 }
 0x605   :  { %v808_v33 = vadd.f32 %v2240_v32, %v805_v29  ;;  %v908_v32 = vld [vmem:[#allocation10 + $0x20] sm:$0xff] }
 0x606   :  { %1643 = vmatpush3.msra.mxu0 %v908_v32 }
 0x607   :  { %1731 = vtanh.f32 %v808_v33  ;;  %1644 = vmatprep.subr.mxu0 %v1877_v0 }
 0x608   :  { %1645 = vmatpush3.msra.mxu0 %v907_v38 }
 0x609   :  { %1646 = vmatprep.subr.mxu0 %v1877_v0 }
 0x60a   :  { %1647 = vmatpush3.msra.mxu0 %v906_v39 }
 0x60b   :  { %1648 = vmatprep.subr.mxu0 %v1877_v0 }
 0x60c   :  { %1649 = vmatpush3.msra.mxu0 %v905_v40 }
 0x60d   :  { %1650 = vmatprep.subr.mxu0 %v1877_v0 }
 0x60e   :  { %1651 = vmatpush3.msra.mxu0 %v904_v41 }
 0x60f   :  { %1690 = vmatprep.subr.mxu0 %v1877_v0 }
 0x614   :  { %v2307_v34 = vpop.eup %1731 }
 0x615   :  { %1618 = vmatmul.mubr.f32.vlgmr.msra.gmra.mxu1 %v2307_v34 }
 0x616   :  { %1687 = vmatprep.mubr.msk.f32.mxu1 %vm1878_vm0, %v1877_v0  ;;  %1656 = vmatpush3.msra.mxu1 %v1015_v47 }
 0x617   :  { %1657 = vmatprep.subr.mxu1 %v1877_v0 }
 0x618   :  { %1658 = vmatpush3.msra.mxu1 %v1014_v48 }
 0x619   :  { %1659 = vmatprep.subr.mxu1 %v1877_v0 }
 0x61a   :  { %1660 = vmatpush3.msra.mxu1 %v1013_v49 }
 0x61b   :  { %1661 = vmatprep.subr.mxu1 %v1877_v0 }
 0x61c   :  { %1662 = vmatpush3.msra.mxu1 %v1012_v50 }
 0x61d   :  { %1663 = vmatprep.subr.mxu1 %v1877_v0 }
 0x61e   :  { %1664 = vmatpush3.msra.mxu1 %v1011_v51 }
 0x61f   :  { %1665 = vmatprep.subr.mxu1 %v1877_v0 }
 0x620   :  { %1666 = vmatpush3.msra.mxu1 %v1010_v52 }
 0x621   :  { %1667 = vmatprep.subr.mxu1 %v1877_v0 }
 0x622   :  { %1668 = vmatpush3.msra.mxu1 %v1009_v53 }
 0x623   :  { %1669 = vmatprep.subr.mxu1 %v1877_v0 }
 0x624   :  { %1670 = vmatpush3.msra.mxu1 %v1008_v54 }
 0x625   :  { %1671 = vmatprep.subr.mxu1 %v1877_v0 }
 0x626   :  { %1672 = vmatpush3.msra.mxu1 %v1007_v55 }
 0x627   :  { %1673 = vmatprep.subr.mxu1 %v1877_v0 }
 0x628   :  { %1674 = vmatpush3.msra.mxu1 %v1006_v56 }
 0x629   :  { %1675 = vmatprep.subr.mxu1 %v1877_v0 }
 0x62a   :  { %1676 = vmatpush3.msra.mxu1 %v1005_v57 }
 0x62b   :  { %1677 = vmatprep.subr.mxu1 %v1877_v0 }
 0x62c   :  { %1678 = vmatpush3.msra.mxu1 %v1004_v58 }
 0x62d   :  { %1679 = vmatprep.subr.mxu1 %v1877_v0 }
 0x62e   :  { %1680 = vmatpush3.msra.mxu1 %v1003_v59 }
 0x62f   :  { %1681 = vmatprep.subr.mxu1 %v1877_v0 }
 0x630   :  { %1682 = vmatpush3.msra.mxu1 %v1002_v60 }
 0x631   :  { %1683 = vmatprep.subr.mxu1 %v1877_v0 }
 0x632   :  { %1684 = vmatpush3.msra.mxu1 %v1001_v61 }
 0x633   :  { %1685 = vmatprep.subr.mxu1 %v1877_v0 }
 0x634   :  { %1686 = vmatpush3.msra.mxu1 %v1000_v62 }
 0x6d5   :  { %v899_v43 = vpop.f32.mrf.mxu1 }
 0x6d6   :  { %v900_v44 = vadd.f32 %v1201_v42, %v899_v43 }
 0x6d7   :  { %v1619_v45 = vpop.f32.mrf.mxu1 }
 0x6d8   :  { %1733 = vtanh.f32 %v900_v44 }
 0x6e5   :  { %v1734_v46 = vpop.eup %1733 }
 0x6e6   :  { %1653 = vmatmul.mubr.f32.vlgmr.msra.gmra.mxu0 %v1734_v46 }
 0x6e7   :  { %1706 = vmatprep.mubr.msk.f32.mxu0 %vm1878_vm0, %v1877_v0  ;;  %1691 = vmatpush3.msra.mxu0 %v1101_v7 }
 0x6e8   :  { %1692 = vmatprep.subr.mxu0 %v1877_v0 }
 0x6e9   :  { %1693 = vmatpush3.msra.mxu0 %v1100_v8 }
 0x6ea   :  { %1694 = vmatprep.subr.mxu0 %v1877_v0 }
 0x6eb   :  { %1695 = vmatpush3.msra.mxu0 %v1099_v9 }
 0x6ec   :  { %1696 = vmatprep.subr.mxu0 %v1877_v0 }
 0x6ed   :  { %1697 = vmatpush3.msra.mxu0 %v1098_v10 }
 0x6ee   :  { %1698 = vmatprep.subr.mxu0 %v1877_v0 }
 0x6ef   :  { %1699 = vmatpush3.msra.mxu0 %v1097_v11 }
 0x6f0   :  { %1700 = vmatprep.subr.mxu0 %v1877_v0 }
 0x6f1   :  { %1701 = vmatpush3.msra.mxu0 %v1096_v12 }
 0x6f2   :  { %1702 = vmatprep.subr.mxu0 %v1877_v0 }
 0x6f3   :  { %1703 = vmatpush3.msra.mxu0 %v1095_v13 }
 0x6f4   :  { %1704 = vmatprep.subr.mxu0 %v1877_v0 }
 0x6f5   :  { %1705 = vmatpush3.msra.mxu0 %v1094_v14 }
 0x7a6   :  { %v993_v1 = vpop.f32.mrf.mxu0 }
 0x7a7   :  { %v994_v2 = vadd.f32 %v1202_v63, %v993_v1 }
 0x7a8   :  { %v1654_v3 = vpop.f32.mrf.mxu0 }
 0x7a9   :  { %1735 = vtanh.f32 %v994_v2 }
 0x7b6   :  { %v1736_v4 = vpop.eup %1735 }
 0x7b7   :  { %v998_v5 = vadd.f32 %v1736_v4, %v2307_v34 }
 0x7b9   :  { %1737 = vtanh.f32 %v998_v5 }
 0x7c6   :  { %v1738_v6 = vpop.eup %1737 }
 0x7c7   :  { %1688 = vmatmul.mubr.f32.vlgmr.msra.gmra.mxu1 %v1738_v6 }
 0x887   :  { %v1089_v16 = vpop.f32.mrf.mxu1 }
 0x888   :  { %v1090_v17 = vadd.f32 %v1203_v15, %v1089_v16 }
 0x889   :  { %v1689_v18 = vpop.f32.mrf.mxu1 }
 0x88a   :  { %1739 = vtanh.f32 %v1090_v17 }
 0x897   :  { %v1740_v19 = vpop.eup %1739 }
 0x898   :  { %1707 = vmatmul.mubr.msk.f32.vlgmr.msra.gmra.mxu0 %vm1109_vm3, %v1740_v19 }
 0x958   :  { %v1179_v21 = vpop.f32.mrf.mxu0 }
 0x959   :  { %v1180_v22 = vadd.f32 %v1204_v20, %v1179_v21 }
 0x95a   :  { %v1708_v23 = vpop.f32.mrf.mxu0 }
 0x95b   :  { %1183 = vst.msk [vmem:[%s2457_s23] sm:$0xff] %vm165_vm2, %v1180_v22 }
 0x95c   :  { %1188 = vsyncpa [#allocation3], 1 }
 0x95d   :  { %1189 = vsyncpa [#allocation5], 1 }
 0x95e   :  { %1190 = vsyncpa [#allocation8], 1 }
 0x95f   :  { %1191 = vsyncpa [#allocation11], 1 }

</bundles_post_ra>
